<compile_context>
chip_gen: v7x
topology: tpu7x:2x2x1
jax: 0.10.0
libtpu: 0.0.40
codegen_flags: <defaults>
</compile_context>

<pallas_src>
import jax
import jax.numpy as jnp
from jax.experimental import pallas as pl
from jax.experimental.pallas import tpu as pltpu

NEG_SLOPE = 0.2   # DGL GATConv default negative_slope
NEG_INF = -1e30   # f32 mask sentinel (kept in f32 only)

_VMEM = pl.BlockSpec(memory_space=pltpu.MemorySpace.VMEM)


# --------------------------------------------------------------------------
# Fused Pallas kernel
# --------------------------------------------------------------------------
def _gat_layer(h, adj_t, w, al_t, ar_t, b, *, apply_relu):
    """One single-head GATConv layer, destination-major attention layout.

    h:     (N, Fin)    f32 node features (Fin lane-padded)
    adj_t: (N, N)      f32, adj_t[v, u] = 1 iff edge u -> v
    w:     (Fin, Fout) projection (both dims lane-padded)
    al_t:  (Fout, 1)   attn_l (column vector, zero-padded rows)
    ar_t:  (Fout, 1)   attn_r (column vector, zero-padded rows)
    b:     (1, Fout)   bias (zero-padded)
    Returns (out (N, Fout) f32, alpha (N, N) f32 with alpha[v, u]).
    """
    # Projection on the MXU: bf16 operands, f32 accumulation.
    feat = jnp.dot(h.astype(jnp.bfloat16), w.astype(jnp.bfloat16),
                   preferred_element_type=jnp.float32)              # (N, Fout)

    # el/er via tiny MXU matmuls (no cross-lane XLU reduction).
    el = jnp.dot(feat, al_t, preferred_element_type=jnp.float32)    # (N, 1)
    er = jnp.dot(feat, ar_t, preferred_element_type=jnp.float32)    # (N, 1)

    # Destination-major logits: e[v, u] = er[v] + el[u]
    e = er + el.T                                                   # (N, N)
    e = jnp.where(e > 0, e, NEG_SLOPE * e)                          # LeakyReLU
    e = jnp.where(adj_t > 0, e, NEG_INF)                            # mask non-edges

    # Softmax over source nodes == lane axis (graphs carry self-loops, so
    # every destination has at least one in-edge).
    m = jnp.max(e, axis=-1, keepdims=True)
    p = jnp.exp(e - m)                                              # non-edges -> 0
    s = jnp.maximum(jnp.sum(p, axis=-1, keepdims=True), 1e-30)
    alpha = p * pl.reciprocal(s, approx=True)                       # (N, N)

    # rst[v] = sum_u alpha[v, u] * feat[u]   (no transpose, straight to MXU)
    out = jnp.dot(alpha.astype(jnp.bfloat16), feat.astype(jnp.bfloat16),
                  preferred_element_type=jnp.float32) + b
    if apply_relu:
        out = jnp.maximum(out, 0.0)
    return out, alpha


def gat_model_kernel(x_ref, adj_t_ref,
                     w1_ref, al1_ref, ar1_ref, b1_ref,
                     w2_ref, al2_ref, ar2_ref, b2_ref,
                     w3_ref, al3_ref, ar3_ref, b3_ref,
                     w4_ref, al4_ref, ar4_ref, b4_ref,
                     lw1_ref, lb1_ref, lw2_ref, lb2_ref, lw3_ref, lb3_ref,
                     res_ref, att_ref):
    """Whole GAT forward pass, everything resident in VMEM."""
    adj_t = adj_t_ref[...]
    h = x_ref[...]

    h, _ = _gat_layer(h, adj_t, w1_ref[...], al1_ref[...], ar1_ref[...],
                      b1_ref[...], apply_relu=True)
    h, _ = _gat_layer(h, adj_t, w2_ref[...], al2_ref[...], ar2_ref[...],
                      b2_ref[...], apply_relu=True)
    h, _ = _gat_layer(h, adj_t, w3_ref[...], al3_ref[...], ar3_ref[...],
                      b3_ref[...], apply_relu=True)
    h, alpha = _gat_layer(h, adj_t, w4_ref[...], al4_ref[...], ar4_ref[...],
                          b4_ref[...], apply_relu=False)
    att_ref[...] = alpha                 # only the final layer's attention

    # Mean-node readout + 3 Linear layers + softmax(dim=1).
    hg = jnp.mean(h, axis=0, keepdims=True)                          # (1, 128)
    r = jnp.maximum(jnp.dot(hg, lw1_ref[...],
                            preferred_element_type=jnp.float32) + lb1_ref[...], 0.0)
    r = jnp.maximum(jnp.dot(r, lw2_ref[...],
                            preferred_element_type=jnp.float32) + lb2_ref[...], 0.0)
    logits = jnp.dot(r, lw3_ref[...],
                     preferred_element_type=jnp.float32) + lb3_ref[...]  # (1, 2)
    mx = jnp.max(logits, axis=1, keepdims=True)
    ex = jnp.exp(logits - mx)
    res_ref[...] = ex * pl.reciprocal(jnp.sum(ex, axis=1, keepdims=True),
                                      approx=True)


# --------------------------------------------------------------------------
# Wrapper: lane-pad everything, one pallas_call for the whole model
# --------------------------------------------------------------------------
def _rup(n, m=128):
    return ((n + m - 1) // m) * m


def _pad_to(a, shape):
    return jnp.pad(a, [(0, t - s) for s, t in zip(a.shape, shape)])


def gat_forward(params, x, adj, edge_src, edge_dst):
    n = x.shape[0]
    adj_t = adj.T                                 # destination-major adjacency

    # Zero-pad all feature dims to multiples of 128 (lane-dense MXU operands).
    fin_p = _rup(x.shape[1])
    flat = [_pad_to(x, (n, fin_p)), adj_t]
    for layer in params["gat"]:
        fout_p = _rup(layer["w"].shape[1])
        flat += [_pad_to(layer["w"], (fin_p, fout_p)),
                 _pad_to(layer["al_t"], (fout_p, 1)),
                 _pad_to(layer["ar_t"], (fout_p, 1)),
                 _pad_to(layer["b"], (1, fout_p))]
        fin_p = fout_p

    d1_out = _rup(params["lin1_w"].shape[1])      # 60  -> 128
    d2_out = _rup(params["lin2_w"].shape[1])      # 30  -> 128
    n_cls = params["lin3_w"].shape[1]             # 2 classes: NOT padded (softmax)
    flat += [_pad_to(params["lin1_w"], (fin_p, d1_out)),
             _pad_to(params["lin1_b"], (1, d1_out)),
             _pad_to(params["lin2_w"], (d1_out, d2_out)),
             _pad_to(params["lin2_b"], (1, d2_out)),
             _pad_to(params["lin3_w"], (d2_out, n_cls)),
             params["lin3_b"]]

    res, att_t = pl.pallas_call(
        gat_model_kernel,
        out_shape=(jax.ShapeDtypeStruct((1, n_cls), jnp.float32),
                   jax.ShapeDtypeStruct((n, n), jnp.float32)),
        in_specs=[_VMEM] * len(flat),
        out_specs=(_VMEM, _VMEM),
    )(*flat)

    # att_t is destination-major: att_t[v, u] == alpha[u -> v].
    # Per-edge attention (matches torch.squeeze(att) of DGL's (E, 1, 1) tensor).
    att_edges = att_t[edge_dst, edge_src]
    return res, att_edges


# --------------------------------------------------------------------------
# Deterministic parameter init + example run
# --------------------------------------------------------------------------
def init_params(key, f_in):
    gat_dims = [(f_in, 160), (160, 240), (240, 180), (180, 120)]
    lin_dims = [(120, 60), (60, 30), (30, 2)]
    params = {"gat": []}
    for fin, fout in gat_dims:
        key, k1, k2, k3 = jax.random.split(key, 4)
        params["gat"].append({
            "w":    jax.random.normal(k1, (fin, fout), jnp.float32) * (1.0 / jnp.sqrt(fin)),
            "al_t": jax.random.normal(k2, (fout, 1), jnp.float32) * 0.1,
            "ar_t": jax.random.normal(k3, (fout, 1), jnp.float32) * 0.1,
            "b":    jnp.zeros((1, fout), jnp.float32),
        })
    names = ["lin1", "lin2", "lin3"]
    for name, (fin, fout) in zip(names, lin_dims):
        key, k1 = jax.random.split(key)
        params[f"{name}_w"] = jax.random.normal(k1, (fin, fout), jnp.float32) * (1.0 / jnp.sqrt(fin))
        params[f"{name}_b"] = jnp.zeros((1, fout), jnp.float32)
    return params


if __name__ == "__main__":
    key = jax.random.PRNGKey(0)
    N = 16            # number of nodes in the (single) graph
    F_IN = 8          # len_feature_space

    # deterministic graph: self-loops + directed ring (every dst has in-edges)
    nodes = jnp.arange(N)
    edge_src = jnp.concatenate([nodes, nodes])
    edge_dst = jnp.concatenate([nodes, (nodes + 1) % N])
    adj = jnp.zeros((N, N), jnp.float32).at[edge_src, edge_dst].set(1.0)

    key, kx = jax.random.split(key)
    x = jax.random.normal(kx, (N, F_IN), jnp.float32)

    params = init_params(key, F_IN)

    res, att = jax.jit(
        lambda p, x_, a_: gat_forward(p, x_, a_, edge_src, edge_dst)
    )(params, x, adj)
    jax.block_until_ready((res, att))

    assert res.shape == (1, 2)
    assert att.shape == (edge_src.shape[0],)
    assert bool(jnp.all(jnp.isfinite(res))) and bool(jnp.all(jnp.isfinite(att)))
    print("KERNEL_OK")
</pallas_src>

<mosaic_0001>
module attributes {stable_mosaic.version = 11 : i64} {
  func.func @gat_model_kernel(%arg0: memref<16x128xf32, #tpu.memory_space<vmem>>, %arg1: memref<16x16xf32, #tpu.memory_space<vmem>>, %arg2: memref<128x256xf32, #tpu.memory_space<vmem>>, %arg3: memref<256x1xf32, #tpu.memory_space<vmem>>, %arg4: memref<256x1xf32, #tpu.memory_space<vmem>>, %arg5: memref<1x256xf32, #tpu.memory_space<vmem>>, %arg6: memref<256x256xf32, #tpu.memory_space<vmem>>, %arg7: memref<256x1xf32, #tpu.memory_space<vmem>>, %arg8: memref<256x1xf32, #tpu.memory_space<vmem>>, %arg9: memref<1x256xf32, #tpu.memory_space<vmem>>, %arg10: memref<256x256xf32, #tpu.memory_space<vmem>>, %arg11: memref<256x1xf32, #tpu.memory_space<vmem>>, %arg12: memref<256x1xf32, #tpu.memory_space<vmem>>, %arg13: memref<1x256xf32, #tpu.memory_space<vmem>>, %arg14: memref<256x128xf32, #tpu.memory_space<vmem>>, %arg15: memref<128x1xf32, #tpu.memory_space<vmem>>, %arg16: memref<128x1xf32, #tpu.memory_space<vmem>>, %arg17: memref<1x128xf32, #tpu.memory_space<vmem>>, %arg18: memref<128x128xf32, #tpu.memory_space<vmem>>, %arg19: memref<1x128xf32, #tpu.memory_space<vmem>>, %arg20: memref<128x128xf32, #tpu.memory_space<vmem>>, %arg21: memref<1x128xf32, #tpu.memory_space<vmem>>, %arg22: memref<128x2xf32, #tpu.memory_space<vmem>>, %arg23: memref<1x2xf32, #tpu.memory_space<vmem>>, %arg24: memref<1x2xf32, #tpu.memory_space<vmem>>, %arg25: memref<16x16xf32, #tpu.memory_space<vmem>>) attributes {dimension_semantics = [], scalar_prefetch = 0 : i64, scratch_operands = 0 : i64, tpu.core_type = #tpu.core_type<tc>} {
    %c0 = arith.constant 0 : index
    %c0_0 = arith.constant 0 : index
    %0 = vector.load %arg1[%c0, %c0_0] : memref<16x16xf32, #tpu.memory_space<vmem>>, vector<16x16xf32>
    %c0_1 = arith.constant 0 : index
    %c0_2 = arith.constant 0 : index
    %1 = vector.load %arg0[%c0_1, %c0_2] : memref<16x128xf32, #tpu.memory_space<vmem>>, vector<16x128xf32>
    %c0_3 = arith.constant 0 : index
    %c0_4 = arith.constant 0 : index
    %2 = vector.load %arg2[%c0_3, %c0_4] : memref<128x256xf32, #tpu.memory_space<vmem>>, vector<128x256xf32>
    %c0_5 = arith.constant 0 : index
    %c0_6 = arith.constant 0 : index
    %3 = vector.load %arg3[%c0_5, %c0_6] : memref<256x1xf32, #tpu.memory_space<vmem>>, vector<256x1xf32>
    %c0_7 = arith.constant 0 : index
    %c0_8 = arith.constant 0 : index
    %4 = vector.load %arg4[%c0_7, %c0_8] : memref<256x1xf32, #tpu.memory_space<vmem>>, vector<256x1xf32>
    %c0_9 = arith.constant 0 : index
    %c0_10 = arith.constant 0 : index
    %5 = vector.load %arg5[%c0_9, %c0_10] : memref<1x256xf32, #tpu.memory_space<vmem>>, vector<1x256xf32>
    %6 = arith.truncf %1 : vector<16x128xf32> to vector<16x128xbf16>
    %7 = arith.truncf %2 : vector<128x256xf32> to vector<128x256xbf16>
    %cst = arith.constant dense<0.000000e+00> : vector<16x256xf32>
    %8 = tpu.matmul %6, %7, %cst {dimension_numbers = #tpu.dot_dimension_numbers<[1], [0], [0], [1], [0, 0, 1, 1], [], []>} : vector<16x128xbf16>, vector<128x256xbf16>, vector<16x256xf32> -> vector<16x256xf32>
    %cst_11 = arith.constant dense<0.000000e+00> : vector<16x1xf32>
    %9 = tpu.matmul %8, %3, %cst_11 {dimension_numbers = #tpu.dot_dimension_numbers<[1], [0], [0], [1], [0, 0, 1, 1], [], []>} : vector<16x256xf32>, vector<256x1xf32>, vector<16x1xf32> -> vector<16x1xf32>
    %cst_12 = arith.constant dense<0.000000e+00> : vector<16x1xf32>
    %10 = tpu.matmul %8, %4, %cst_12 {dimension_numbers = #tpu.dot_dimension_numbers<[1], [0], [0], [1], [0, 0, 1, 1], [], []>} : vector<16x256xf32>, vector<256x1xf32>, vector<16x1xf32> -> vector<16x1xf32>
    %11 = tpu.transpose %9, [1, 0] : vector<16x1xf32> -> vector<1x16xf32>
    %12 = vector.broadcast %10 : vector<16x1xf32> to vector<16x16xf32>
    %13 = vector.broadcast %11 : vector<1x16xf32> to vector<16x16xf32>
    %14 = arith.addf %12, %13 : vector<16x16xf32>
    %cst_13 = arith.constant 0.000000e+00 : f32
    %15 = vector.broadcast %cst_13 : f32 to vector<16x16xf32>
    %16 = arith.cmpf ogt, %14, %15 : vector<16x16xf32>
    %cst_14 = arith.constant 2.000000e-01 : f32
    %17 = vector.broadcast %cst_14 : f32 to vector<16x16xf32>
    %18 = arith.mulf %17, %14 : vector<16x16xf32>
    %19 = arith.select %16, %14, %18 : vector<16x16xi1>, vector<16x16xf32>
    %cst_15 = arith.constant 0.000000e+00 : f32
    %20 = vector.broadcast %cst_15 : f32 to vector<16x16xf32>
    %21 = arith.cmpf ogt, %0, %20 : vector<16x16xf32>
    %cst_16 = arith.constant -1.000000e+30 : f32
    %22 = vector.broadcast %cst_16 : f32 to vector<16x16xf32>
    %23 = arith.select %21, %19, %22 : vector<16x16xi1>, vector<16x16xf32>
    %cst_17 = arith.constant dense<0xFF800000> : vector<16xf32>
    %24 = vector.multi_reduction <maximumf>, %23, %cst_17 [1] : vector<16x16xf32> to vector<16xf32>
    %25 = vector.shape_cast %24 : vector<16xf32> to vector<16x1xf32>
    %26 = vector.broadcast %25 : vector<16x1xf32> to vector<16x16xf32>
    %27 = arith.subf %23, %26 : vector<16x16xf32>
    %28 = math.exp %27 : vector<16x16xf32>
    %cst_18 = arith.constant dense<0.000000e+00> : vector<16xf32>
    %29 = vector.multi_reduction <add>, %28, %cst_18 [1] : vector<16x16xf32> to vector<16xf32>
    %30 = vector.shape_cast %29 : vector<16xf32> to vector<16x1xf32>
    %cst_19 = arith.constant 1.000000e-30 : f32
    %31 = vector.broadcast %cst_19 : f32 to vector<16x1xf32>
    %32 = arith.maximumf %30, %31 : vector<16x1xf32>
    %33 = tpu.reciprocal %32 {approx = true} : vector<16x1xf32> -> vector<16x1xf32>
    %34 = vector.broadcast %33 : vector<16x1xf32> to vector<16x16xf32>
    %35 = arith.mulf %28, %34 : vector<16x16xf32>
    %36 = arith.truncf %35 : vector<16x16xf32> to vector<16x16xbf16>
    %37 = arith.truncf %8 : vector<16x256xf32> to vector<16x256xbf16>
    %cst_20 = arith.constant dense<0.000000e+00> : vector<16x256xf32>
    %38 = tpu.matmul %36, %37, %cst_20 {dimension_numbers = #tpu.dot_dimension_numbers<[1], [0], [0], [1], [0, 0, 1, 1], [], []>} : vector<16x16xbf16>, vector<16x256xbf16>, vector<16x256xf32> -> vector<16x256xf32>
    %39 = vector.broadcast %5 : vector<1x256xf32> to vector<16x256xf32>
    %40 = arith.addf %38, %39 : vector<16x256xf32>
    %cst_21 = arith.constant 0.000000e+00 : f32
    %41 = vector.broadcast %cst_21 : f32 to vector<16x256xf32>
    %42 = arith.maximumf %40, %41 : vector<16x256xf32>
    %c0_22 = arith.constant 0 : index
    %c0_23 = arith.constant 0 : index
    %43 = vector.load %arg6[%c0_22, %c0_23] : memref<256x256xf32, #tpu.memory_space<vmem>>, vector<256x256xf32>
    %c0_24 = arith.constant 0 : index
    %c0_25 = arith.constant 0 : index
    %44 = vector.load %arg7[%c0_24, %c0_25] : memref<256x1xf32, #tpu.memory_space<vmem>>, vector<256x1xf32>
    %c0_26 = arith.constant 0 : index
    %c0_27 = arith.constant 0 : index
    %45 = vector.load %arg8[%c0_26, %c0_27] : memref<256x1xf32, #tpu.memory_space<vmem>>, vector<256x1xf32>
    %c0_28 = arith.constant 0 : index
    %c0_29 = arith.constant 0 : index
    %46 = vector.load %arg9[%c0_28, %c0_29] : memref<1x256xf32, #tpu.memory_space<vmem>>, vector<1x256xf32>
    %47 = arith.truncf %42 : vector<16x256xf32> to vector<16x256xbf16>
    %48 = arith.truncf %43 : vector<256x256xf32> to vector<256x256xbf16>
    %cst_30 = arith.constant dense<0.000000e+00> : vector<16x256xf32>
    %49 = tpu.matmul %47, %48, %cst_30 {dimension_numbers = #tpu.dot_dimension_numbers<[1], [0], [0], [1], [0, 0, 1, 1], [], []>} : vector<16x256xbf16>, vector<256x256xbf16>, vector<16x256xf32> -> vector<16x256xf32>
    %cst_31 = arith.constant dense<0.000000e+00> : vector<16x1xf32>
    %50 = tpu.matmul %49, %44, %cst_31 {dimension_numbers = #tpu.dot_dimension_numbers<[1], [0], [0], [1], [0, 0, 1, 1], [], []>} : vector<16x256xf32>, vector<256x1xf32>, vector<16x1xf32> -> vector<16x1xf32>
    %cst_32 = arith.constant dense<0.000000e+00> : vector<16x1xf32>
    %51 = tpu.matmul %49, %45, %cst_32 {dimension_numbers = #tpu.dot_dimension_numbers<[1], [0], [0], [1], [0, 0, 1, 1], [], []>} : vector<16x256xf32>, vector<256x1xf32>, vector<16x1xf32> -> vector<16x1xf32>
    %52 = tpu.transpose %50, [1, 0] : vector<16x1xf32> -> vector<1x16xf32>
    %53 = vector.broadcast %51 : vector<16x1xf32> to vector<16x16xf32>
    %54 = vector.broadcast %52 : vector<1x16xf32> to vector<16x16xf32>
    %55 = arith.addf %53, %54 : vector<16x16xf32>
    %cst_33 = arith.constant 0.000000e+00 : f32
    %56 = vector.broadcast %cst_33 : f32 to vector<16x16xf32>
    %57 = arith.cmpf ogt, %55, %56 : vector<16x16xf32>
    %cst_34 = arith.constant 2.000000e-01 : f32
    %58 = vector.broadcast %cst_34 : f32 to vector<16x16xf32>
    %59 = arith.mulf %58, %55 : vector<16x16xf32>
    %60 = arith.select %57, %55, %59 : vector<16x16xi1>, vector<16x16xf32>
    %cst_35 = arith.constant 0.000000e+00 : f32
    %61 = vector.broadcast %cst_35 : f32 to vector<16x16xf32>
    %62 = arith.cmpf ogt, %0, %61 : vector<16x16xf32>
    %cst_36 = arith.constant -1.000000e+30 : f32
    %63 = vector.broadcast %cst_36 : f32 to vector<16x16xf32>
    %64 = arith.select %62, %60, %63 : vector<16x16xi1>, vector<16x16xf32>
    %cst_37 = arith.constant dense<0xFF800000> : vector<16xf32>
    %65 = vector.multi_reduction <maximumf>, %64, %cst_37 [1] : vector<16x16xf32> to vector<16xf32>
    %66 = vector.shape_cast %65 : vector<16xf32> to vector<16x1xf32>
    %67 = vector.broadcast %66 : vector<16x1xf32> to vector<16x16xf32>
    %68 = arith.subf %64, %67 : vector<16x16xf32>
    %69 = math.exp %68 : vector<16x16xf32>
    %cst_38 = arith.constant dense<0.000000e+00> : vector<16xf32>
    %70 = vector.multi_reduction <add>, %69, %cst_38 [1] : vector<16x16xf32> to vector<16xf32>
    %71 = vector.shape_cast %70 : vector<16xf32> to vector<16x1xf32>
    %cst_39 = arith.constant 1.000000e-30 : f32
    %72 = vector.broadcast %cst_39 : f32 to vector<16x1xf32>
    %73 = arith.maximumf %71, %72 : vector<16x1xf32>
    %74 = tpu.reciprocal %73 {approx = true} : vector<16x1xf32> -> vector<16x1xf32>
    %75 = vector.broadcast %74 : vector<16x1xf32> to vector<16x16xf32>
    %76 = arith.mulf %69, %75 : vector<16x16xf32>
    %77 = arith.truncf %76 : vector<16x16xf32> to vector<16x16xbf16>
    %78 = arith.truncf %49 : vector<16x256xf32> to vector<16x256xbf16>
    %cst_40 = arith.constant dense<0.000000e+00> : vector<16x256xf32>
    %79 = tpu.matmul %77, %78, %cst_40 {dimension_numbers = #tpu.dot_dimension_numbers<[1], [0], [0], [1], [0, 0, 1, 1], [], []>} : vector<16x16xbf16>, vector<16x256xbf16>, vector<16x256xf32> -> vector<16x256xf32>
    %80 = vector.broadcast %46 : vector<1x256xf32> to vector<16x256xf32>
    %81 = arith.addf %79, %80 : vector<16x256xf32>
    %cst_41 = arith.constant 0.000000e+00 : f32
    %82 = vector.broadcast %cst_41 : f32 to vector<16x256xf32>
    %83 = arith.maximumf %81, %82 : vector<16x256xf32>
    %c0_42 = arith.constant 0 : index
    %c0_43 = arith.constant 0 : index
    %84 = vector.load %arg10[%c0_42, %c0_43] : memref<256x256xf32, #tpu.memory_space<vmem>>, vector<256x256xf32>
    %c0_44 = arith.constant 0 : index
    %c0_45 = arith.constant 0 : index
    %85 = vector.load %arg11[%c0_44, %c0_45] : memref<256x1xf32, #tpu.memory_space<vmem>>, vector<256x1xf32>
    %c0_46 = arith.constant 0 : index
    %c0_47 = arith.constant 0 : index
    %86 = vector.load %arg12[%c0_46, %c0_47] : memref<256x1xf32, #tpu.memory_space<vmem>>, vector<256x1xf32>
    %c0_48 = arith.constant 0 : index
    %c0_49 = arith.constant 0 : index
    %87 = vector.load %arg13[%c0_48, %c0_49] : memref<1x256xf32, #tpu.memory_space<vmem>>, vector<1x256xf32>
    %88 = arith.truncf %83 : vector<16x256xf32> to vector<16x256xbf16>
    %89 = arith.truncf %84 : vector<256x256xf32> to vector<256x256xbf16>
    %cst_50 = arith.constant dense<0.000000e+00> : vector<16x256xf32>
    %90 = tpu.matmul %88, %89, %cst_50 {dimension_numbers = #tpu.dot_dimension_numbers<[1], [0], [0], [1], [0, 0, 1, 1], [], []>} : vector<16x256xbf16>, vector<256x256xbf16>, vector<16x256xf32> -> vector<16x256xf32>
    %cst_51 = arith.constant dense<0.000000e+00> : vector<16x1xf32>
    %91 = tpu.matmul %90, %85, %cst_51 {dimension_numbers = #tpu.dot_dimension_numbers<[1], [0], [0], [1], [0, 0, 1, 1], [], []>} : vector<16x256xf32>, vector<256x1xf32>, vector<16x1xf32> -> vector<16x1xf32>
    %cst_52 = arith.constant dense<0.000000e+00> : vector<16x1xf32>
    %92 = tpu.matmul %90, %86, %cst_52 {dimension_numbers = #tpu.dot_dimension_numbers<[1], [0], [0], [1], [0, 0, 1, 1], [], []>} : vector<16x256xf32>, vector<256x1xf32>, vector<16x1xf32> -> vector<16x1xf32>
    %93 = tpu.transpose %91, [1, 0] : vector<16x1xf32> -> vector<1x16xf32>
    %94 = vector.broadcast %92 : vector<16x1xf32> to vector<16x16xf32>
    %95 = vector.broadcast %93 : vector<1x16xf32> to vector<16x16xf32>
    %96 = arith.addf %94, %95 : vector<16x16xf32>
    %cst_53 = arith.constant 0.000000e+00 : f32
    %97 = vector.broadcast %cst_53 : f32 to vector<16x16xf32>
    %98 = arith.cmpf ogt, %96, %97 : vector<16x16xf32>
    %cst_54 = arith.constant 2.000000e-01 : f32
    %99 = vector.broadcast %cst_54 : f32 to vector<16x16xf32>
    %100 = arith.mulf %99, %96 : vector<16x16xf32>
    %101 = arith.select %98, %96, %100 : vector<16x16xi1>, vector<16x16xf32>
    %cst_55 = arith.constant 0.000000e+00 : f32
    %102 = vector.broadcast %cst_55 : f32 to vector<16x16xf32>
    %103 = arith.cmpf ogt, %0, %102 : vector<16x16xf32>
    %cst_56 = arith.constant -1.000000e+30 : f32
    %104 = vector.broadcast %cst_56 : f32 to vector<16x16xf32>
    %105 = arith.select %103, %101, %104 : vector<16x16xi1>, vector<16x16xf32>
    %cst_57 = arith.constant dense<0xFF800000> : vector<16xf32>
    %106 = vector.multi_reduction <maximumf>, %105, %cst_57 [1] : vector<16x16xf32> to vector<16xf32>
    %107 = vector.shape_cast %106 : vector<16xf32> to vector<16x1xf32>
    %108 = vector.broadcast %107 : vector<16x1xf32> to vector<16x16xf32>
    %109 = arith.subf %105, %108 : vector<16x16xf32>
    %110 = math.exp %109 : vector<16x16xf32>
    %cst_58 = arith.constant dense<0.000000e+00> : vector<16xf32>
    %111 = vector.multi_reduction <add>, %110, %cst_58 [1] : vector<16x16xf32> to vector<16xf32>
    %112 = vector.shape_cast %111 : vector<16xf32> to vector<16x1xf32>
    %cst_59 = arith.constant 1.000000e-30 : f32
    %113 = vector.broadcast %cst_59 : f32 to vector<16x1xf32>
    %114 = arith.maximumf %112, %113 : vector<16x1xf32>
    %115 = tpu.reciprocal %114 {approx = true} : vector<16x1xf32> -> vector<16x1xf32>
    %116 = vector.broadcast %115 : vector<16x1xf32> to vector<16x16xf32>
    %117 = arith.mulf %110, %116 : vector<16x16xf32>
    %118 = arith.truncf %117 : vector<16x16xf32> to vector<16x16xbf16>
    %119 = arith.truncf %90 : vector<16x256xf32> to vector<16x256xbf16>
    %cst_60 = arith.constant dense<0.000000e+00> : vector<16x256xf32>
    %120 = tpu.matmul %118, %119, %cst_60 {dimension_numbers = #tpu.dot_dimension_numbers<[1], [0], [0], [1], [0, 0, 1, 1], [], []>} : vector<16x16xbf16>, vector<16x256xbf16>, vector<16x256xf32> -> vector<16x256xf32>
    %121 = vector.broadcast %87 : vector<1x256xf32> to vector<16x256xf32>
    %122 = arith.addf %120, %121 : vector<16x256xf32>
    %cst_61 = arith.constant 0.000000e+00 : f32
    %123 = vector.broadcast %cst_61 : f32 to vector<16x256xf32>
    %124 = arith.maximumf %122, %123 : vector<16x256xf32>
    %c0_62 = arith.constant 0 : index
    %c0_63 = arith.constant 0 : index
    %125 = vector.load %arg14[%c0_62, %c0_63] : memref<256x128xf32, #tpu.memory_space<vmem>>, vector<256x128xf32>
    %c0_64 = arith.constant 0 : index
    %c0_65 = arith.constant 0 : index
    %126 = vector.load %arg15[%c0_64, %c0_65] : memref<128x1xf32, #tpu.memory_space<vmem>>, vector<128x1xf32>
    %c0_66 = arith.constant 0 : index
    %c0_67 = arith.constant 0 : index
    %127 = vector.load %arg16[%c0_66, %c0_67] : memref<128x1xf32, #tpu.memory_space<vmem>>, vector<128x1xf32>
    %c0_68 = arith.constant 0 : index
    %c0_69 = arith.constant 0 : index
    %128 = vector.load %arg17[%c0_68, %c0_69] : memref<1x128xf32, #tpu.memory_space<vmem>>, vector<1x128xf32>
    %129 = arith.truncf %124 : vector<16x256xf32> to vector<16x256xbf16>
    %130 = arith.truncf %125 : vector<256x128xf32> to vector<256x128xbf16>
    %cst_70 = arith.constant dense<0.000000e+00> : vector<16x128xf32>
    %131 = tpu.matmul %129, %130, %cst_70 {dimension_numbers = #tpu.dot_dimension_numbers<[1], [0], [0], [1], [0, 0, 1, 1], [], []>} : vector<16x256xbf16>, vector<256x128xbf16>, vector<16x128xf32> -> vector<16x128xf32>
    %cst_71 = arith.constant dense<0.000000e+00> : vector<16x1xf32>
    %132 = tpu.matmul %131, %126, %cst_71 {dimension_numbers = #tpu.dot_dimension_numbers<[1], [0], [0], [1], [0, 0, 1, 1], [], []>} : vector<16x128xf32>, vector<128x1xf32>, vector<16x1xf32> -> vector<16x1xf32>
    %cst_72 = arith.constant dense<0.000000e+00> : vector<16x1xf32>
    %133 = tpu.matmul %131, %127, %cst_72 {dimension_numbers = #tpu.dot_dimension_numbers<[1], [0], [0], [1], [0, 0, 1, 1], [], []>} : vector<16x128xf32>, vector<128x1xf32>, vector<16x1xf32> -> vector<16x1xf32>
    %134 = tpu.transpose %132, [1, 0] : vector<16x1xf32> -> vector<1x16xf32>
    %135 = vector.broadcast %133 : vector<16x1xf32> to vector<16x16xf32>
    %136 = vector.broadcast %134 : vector<1x16xf32> to vector<16x16xf32>
    %137 = arith.addf %135, %136 : vector<16x16xf32>
    %cst_73 = arith.constant 0.000000e+00 : f32
    %138 = vector.broadcast %cst_73 : f32 to vector<16x16xf32>
    %139 = arith.cmpf ogt, %137, %138 : vector<16x16xf32>
    %cst_74 = arith.constant 2.000000e-01 : f32
    %140 = vector.broadcast %cst_74 : f32 to vector<16x16xf32>
    %141 = arith.mulf %140, %137 : vector<16x16xf32>
    %142 = arith.select %139, %137, %141 : vector<16x16xi1>, vector<16x16xf32>
    %cst_75 = arith.constant 0.000000e+00 : f32
    %143 = vector.broadcast %cst_75 : f32 to vector<16x16xf32>
    %144 = arith.cmpf ogt, %0, %143 : vector<16x16xf32>
    %cst_76 = arith.constant -1.000000e+30 : f32
    %145 = vector.broadcast %cst_76 : f32 to vector<16x16xf32>
    %146 = arith.select %144, %142, %145 : vector<16x16xi1>, vector<16x16xf32>
    %cst_77 = arith.constant dense<0xFF800000> : vector<16xf32>
    %147 = vector.multi_reduction <maximumf>, %146, %cst_77 [1] : vector<16x16xf32> to vector<16xf32>
    %148 = vector.shape_cast %147 : vector<16xf32> to vector<16x1xf32>
    %149 = vector.broadcast %148 : vector<16x1xf32> to vector<16x16xf32>
    %150 = arith.subf %146, %149 : vector<16x16xf32>
    %151 = math.exp %150 : vector<16x16xf32>
    %cst_78 = arith.constant dense<0.000000e+00> : vector<16xf32>
    %152 = vector.multi_reduction <add>, %151, %cst_78 [1] : vector<16x16xf32> to vector<16xf32>
    %153 = vector.shape_cast %152 : vector<16xf32> to vector<16x1xf32>
    %cst_79 = arith.constant 1.000000e-30 : f32
    %154 = vector.broadcast %cst_79 : f32 to vector<16x1xf32>
    %155 = arith.maximumf %153, %154 : vector<16x1xf32>
    %156 = tpu.reciprocal %155 {approx = true} : vector<16x1xf32> -> vector<16x1xf32>
    %157 = vector.broadcast %156 : vector<16x1xf32> to vector<16x16xf32>
    %158 = arith.mulf %151, %157 : vector<16x16xf32>
    %159 = arith.truncf %158 : vector<16x16xf32> to vector<16x16xbf16>
    %160 = arith.truncf %131 : vector<16x128xf32> to vector<16x128xbf16>
    %cst_80 = arith.constant dense<0.000000e+00> : vector<16x128xf32>
    %161 = tpu.matmul %159, %160, %cst_80 {dimension_numbers = #tpu.dot_dimension_numbers<[1], [0], [0], [1], [0, 0, 1, 1], [], []>} : vector<16x16xbf16>, vector<16x128xbf16>, vector<16x128xf32> -> vector<16x128xf32>
    %162 = vector.broadcast %128 : vector<1x128xf32> to vector<16x128xf32>
    %163 = arith.addf %161, %162 : vector<16x128xf32>
    %c0_81 = arith.constant 0 : index
    %c0_82 = arith.constant 0 : index
    %164 = vector.load %arg25[%c0_81, %c0_82] : memref<16x16xf32, #tpu.memory_space<vmem>>, vector<16x16xf32>
    tpu.vector_store %arg25[%c0_81, %c0_82], %158 {strides = array<i32>} : memref<16x16xf32, #tpu.memory_space<vmem>>, vector<16x16xf32>,
    %cst_83 = arith.constant dense<0.000000e+00> : vector<128xf32>
    %165 = vector.multi_reduction <add>, %163, %cst_83 [0] : vector<16x128xf32> to vector<128xf32>
    %166 = vector.shape_cast %165 : vector<128xf32> to vector<1x128xf32>
    %cst_84 = arith.constant 1.600000e+01 : f32
    %167 = vector.broadcast %cst_84 : f32 to vector<1x128xf32>
    %168 = arith.divf %166, %167 : vector<1x128xf32>
    %c0_85 = arith.constant 0 : index
    %c0_86 = arith.constant 0 : index
    %169 = vector.load %arg18[%c0_85, %c0_86] : memref<128x128xf32, #tpu.memory_space<vmem>>, vector<128x128xf32>
    %cst_87 = arith.constant dense<0.000000e+00> : vector<1x128xf32>
    %170 = tpu.matmul %168, %169, %cst_87 {dimension_numbers = #tpu.dot_dimension_numbers<[1], [0], [0], [1], [0, 0, 1, 1], [], []>} : vector<1x128xf32>, vector<128x128xf32>, vector<1x128xf32> -> vector<1x128xf32>
    %c0_88 = arith.constant 0 : index
    %c0_89 = arith.constant 0 : index
    %171 = vector.load %arg19[%c0_88, %c0_89] : memref<1x128xf32, #tpu.memory_space<vmem>>, vector<1x128xf32>
    %172 = arith.addf %170, %171 : vector<1x128xf32>
    %cst_90 = arith.constant 0.000000e+00 : f32
    %173 = vector.broadcast %cst_90 : f32 to vector<1x128xf32>
    %174 = arith.maximumf %172, %173 : vector<1x128xf32>
    %c0_91 = arith.constant 0 : index
    %c0_92 = arith.constant 0 : index
    %175 = vector.load %arg20[%c0_91, %c0_92] : memref<128x128xf32, #tpu.memory_space<vmem>>, vector<128x128xf32>
    %cst_93 = arith.constant dense<0.000000e+00> : vector<1x128xf32>
    %176 = tpu.matmul %174, %175, %cst_93 {dimension_numbers = #tpu.dot_dimension_numbers<[1], [0], [0], [1], [0, 0, 1, 1], [], []>} : vector<1x128xf32>, vector<128x128xf32>, vector<1x128xf32> -> vector<1x128xf32>
    %c0_94 = arith.constant 0 : index
    %c0_95 = arith.constant 0 : index
    %177 = vector.load %arg21[%c0_94, %c0_95] : memref<1x128xf32, #tpu.memory_space<vmem>>, vector<1x128xf32>
    %178 = arith.addf %176, %177 : vector<1x128xf32>
    %cst_96 = arith.constant 0.000000e+00 : f32
    %179 = vector.broadcast %cst_96 : f32 to vector<1x128xf32>
    %180 = arith.maximumf %178, %179 : vector<1x128xf32>
    %c0_97 = arith.constant 0 : index
    %c0_98 = arith.constant 0 : index
    %181 = vector.load %arg22[%c0_97, %c0_98] : memref<128x2xf32, #tpu.memory_space<vmem>>, vector<128x2xf32>
    %cst_99 = arith.constant dense<0.000000e+00> : vector<1x2xf32>
    %182 = tpu.matmul %180, %181, %cst_99 {dimension_numbers = #tpu.dot_dimension_numbers<[1], [0], [0], [1], [0, 0, 1, 1], [], []>} : vector<1x128xf32>, vector<128x2xf32>, vector<1x2xf32> -> vector<1x2xf32>
    %c0_100 = arith.constant 0 : index
    %c0_101 = arith.constant 0 : index
    %183 = vector.load %arg23[%c0_100, %c0_101] : memref<1x2xf32, #tpu.memory_space<vmem>>, vector<1x2xf32>
    %184 = arith.addf %182, %183 : vector<1x2xf32>
    %cst_102 = arith.constant dense<0xFF800000> : vector<1xf32>
    %185 = vector.multi_reduction <maximumf>, %184, %cst_102 [1] : vector<1x2xf32> to vector<1xf32>
    %186 = vector.shape_cast %185 : vector<1xf32> to vector<1x1xf32>
    %187 = vector.broadcast %186 : vector<1x1xf32> to vector<1x2xf32>
    %188 = arith.subf %184, %187 : vector<1x2xf32>
    %189 = math.exp %188 : vector<1x2xf32>
    %cst_103 = arith.constant dense<0.000000e+00> : vector<1xf32>
    %190 = vector.multi_reduction <add>, %189, %cst_103 [1] : vector<1x2xf32> to vector<1xf32>
    %191 = vector.shape_cast %190 : vector<1xf32> to vector<1x1xf32>
    %192 = tpu.reciprocal %191 {approx = true} : vector<1x1xf32> -> vector<1x1xf32>
    %193 = vector.broadcast %192 : vector<1x1xf32> to vector<1x2xf32>
    %194 = arith.mulf %189, %193 : vector<1x2xf32>
    %c0_104 = arith.constant 0 : index
    %c0_105 = arith.constant 0 : index
    %195 = vector.load %arg24[%c0_104, %c0_105] : memref<1x2xf32, #tpu.memory_space<vmem>>, vector<1x2xf32>
    tpu.vector_store %arg24[%c0_104, %c0_105], %194 {strides = array<i32>} : memref<1x2xf32, #tpu.memory_space<vmem>>, vector<1x2xf32>,
    return
  }
}

</mosaic_0001>

<bundles_post_ra>
// kernel: _lambda_.1
= control target key start
LH: loop header
LB: loop body
LE: loop exit
PB: predicated region body
PF: predicated region fallthrough
CT: control target
= control target key end

     0   :  { %s4872_s0 = inlined_call_operand.vmem [shape: f32[16,128], index: 0, kind: input, shape index: {}]   ;;  %s4873_s1 = inlined_call_operand.vmem [shape: f32[16,16], index: 1, kind: input, shape index: {}]   ;;  %s4874_s2 = inlined_call_operand.vmem [shape: f32[128,256], index: 2, kind: input, shape index: {}]   ;;  %s4875_s3 = inlined_call_operand.vmem [shape: f32[256,1], index: 3, kind: input, shape index: {}]   ;;  %s4876_s4 = inlined_call_operand.vmem [shape: f32[256,1], index: 4, kind: input, shape index: {}]   ;;  %s4877_s5 = inlined_call_operand.vmem [shape: f32[1,256], index: 5, kind: input, shape index: {}]   ;;  %s4878_s6 = inlined_call_operand.vmem [shape: f32[256,256], index: 6, kind: input, shape index: {}]   ;;  %s4879_s7 = inlined_call_operand.vmem [shape: f32[256,1], index: 7, kind: input, shape index: {}]   ;;  %s4880_s8 = inlined_call_operand.vmem [shape: f32[256,1], index: 8, kind: input, shape index: {}]   ;;  %s4881_s9 = inlined_call_operand.vmem [shape: f32[1,256], index: 9, kind: input, shape index: {}]   ;;  %s4882_s10 = inlined_call_operand.vmem [shape: f32[256,256], index: 10, kind: input, shape index: {}]   ;;  %s4883_s11 = inlined_call_operand.vmem [shape: f32[256,1], index: 11, kind: input, shape index: {}]   ;;  %s4884_s12 = inlined_call_operand.vmem [shape: f32[256,1], index: 12, kind: input, shape index: {}]   ;;  %s4885_s13 = inlined_call_operand.vmem [shape: f32[1,256], index: 13, kind: input, shape index: {}]   ;;  %s4886_s14 = inlined_call_operand.vmem [shape: f32[256,128], index: 14, kind: input, shape index: {}]   ;;  %s4887_s15 = inlined_call_operand.vmem [shape: f32[128,1], index: 15, kind: input, shape index: {}]   ;;  %s4888_s16 = inlined_call_operand.vmem [shape: f32[128,1], index: 16, kind: input, shape index: {}]   ;;  %s4889_s17 = inlined_call_operand.vmem [shape: f32[1,128], index: 17, kind: input, shape index: {}]   ;;  %s4890_s18 = inlined_call_operand.vmem [shape: f32[128,128], index: 18, kind: input, shape index: {}]   ;;  %s4891_s19 = inlined_call_operand.vmem [shape: f32[1,128], index: 19, kind: input, shape index: {}]   ;;  %s4892_s20 = inlined_call_operand.vmem [shape: f32[128,128], index: 20, kind: input, shape index: {}]   ;;  %s4893_s21 = inlined_call_operand.vmem [shape: f32[1,128], index: 21, kind: input, shape index: {}]   ;;  %s4894_s22 = inlined_call_operand.vmem [shape: f32[128,2], index: 22, kind: input, shape index: {}]   ;;  %s4895_s23 = inlined_call_operand.vmem [shape: f32[1,2], index: 23, kind: input, shape index: {}]   ;;  %s4896_s24 = inlined_call_operand.hbm [shape: f32[1,2], index: 24, kind: output, shape index: {0}]   ;;  %s4897_s25 = inlined_call_operand.vmem [shape: f32[16,16], index: 25, kind: output, shape index: {1}]  }
   0x1   :  { %4906 = sst [smem:[#allocation5_spill]] %s4872_s0 }
   0x2   :  { %4907 = sst [smem:[#allocation6_spill]] %s4873_s1 }
   0x3   :  { %4908 = sst [smem:[#allocation7_spill]] %s4874_s2 }
   0x4   :  { %4909 = sst [smem:[#allocation8_spill]] %s4875_s3 }
   0x5   :  { %4910 = sst [smem:[#allocation9_spill]] %s4876_s4 }
   0x6   :  { %4911 = sst [smem:[#allocation10_spill]] %s4877_s5 }
   0x7   :  { %4912 = sst [smem:[#allocation11_spill]] %s4878_s6 }
   0x8   :  { %4913 = sst [smem:[#allocation12_spill]] %s4879_s7 }
   0x9   :  { %4914 = sst [smem:[#allocation13_spill]] %s4880_s8 }
   0xa   :  { %4915 = sst [smem:[#allocation14_spill]] %s4881_s9 }
   0xb   :  { %s4916_s6 = sld [smem:[#allocation7_spill]]  ;;  %v3170_v7 = vmov 0   ;;  %s4917_s28 = sld [smem:[#allocation8_spill]] }
   0xc   :  { %231 = vmatprep.mubr.bf16.mxu0 %v3170_v7  ;;  %3108 = vset.pattern.permute.xlu0 %v3170_v7  ;;  %s4918_s4 = sld [smem:[#allocation9_spill]]  ;;  %s4919_s27 = sld [smem:[#allocation5_spill]] }
  0x11   :  { %v86_v0 = vld [vmem:[%s4916_s6 + $0x8] sm:$0xff]  ;;  %v88_v1 = vld [vmem:[%s4916_s6 + $0x18] sm:$0xff]  ;;  %v85_v2 = vld [vmem:[%s4916_s6] sm:$0xff] }
  0x12   :  { %v184_v3 = vpack.c.bf16 %v88_v1, %v86_v0  ;;  %v87_v4 = vld [vmem:[%s4916_s6 + $0x10] sm:$0xff]  ;;  %v90_v5 = vld [vmem:[%s4916_s6 + $0x28] sm:$0xff]  ;;  %v92_v6 = vld [vmem:[%s4916_s6 + $0x38] sm:$0xff] }
  0x13   :  { %v183_v8 = vpack.c.bf16 %v87_v4, %v85_v2  ;;  %v186_v9 = vpack.c.bf16 %v92_v6, %v90_v5  ;;  %v89_v10 = vld [vmem:[%s4916_s6 + $0x20] sm:$0xff]  ;;  %v91_v11 = vld [vmem:[%s4916_s6 + $0x30] sm:$0xff]  ;;  %v94_v12 = vld [vmem:[%s4916_s6 + $0x48] sm:$0xff] }
  0x14   :  { %199 = vmatprep.subr.bf16.mxu0 %v184_v3  ;;  %v96_v13 = vld [vmem:[%s4916_s6 + $0x58] sm:$0xff]  ;;  %v185_v14 = vpack.c.bf16 %v91_v11, %v89_v10  ;;  %v93_v16 = vld [vmem:[%s4916_s6 + $0x40] sm:$0xff]  ;;  %v95_v17 = vld [vmem:[%s4916_s6 + $0x50] sm:$0xff] }
  0x15   :  { %200 = vmatpush1.bf16.msra.mxu0 %v183_v8  ;;  %v188_v15 = vpack.c.bf16 %v96_v13, %v94_v12  ;;  %v98_v18 = vld [vmem:[%s4916_s6 + $0x68] sm:$0xff]  ;;  %v100_v19 = vld [vmem:[%s4916_s6 + $0x78] sm:$0xff]  ;;  %v187_v20 = vpack.c.bf16 %v95_v17, %v93_v16  ;;  %v97_v22 = vld [vmem:[%s4916_s6 + $0x60] sm:$0xff] }
  0x16   :  { %201 = vmatprep.subr.bf16.mxu0 %v186_v9  ;;  %v190_v21 = vpack.c.bf16 %v100_v19, %v98_v18  ;;  %v99_v23 = vld [vmem:[%s4916_s6 + $0x70] sm:$0xff]  ;;  %v102_v24 = vld [vmem:[%s4916_s6 + $0x88] sm:$0xff]  ;;  %v104_v25 = vld [vmem:[%s4916_s6 + $0x98] sm:$0xff] }
  0x17   :  { %v133_v26 = vld [vmem:[%s4917_s28 + $0x80] sm:$0xff]  ;;  %v134_v27 = vld [vmem:[%s4917_s28 + $0x88] sm:$0xff]  ;;  %v189_v28 = vpack.c.bf16 %v99_v23, %v97_v22  ;;  %v192_v32 = vpack.c.bf16 %v104_v25, %v102_v24  ;;  %v103_v33 = vld [vmem:[%s4916_s6 + $0x90] sm:$0xff] }
  0x18   :  { %v101_v29 = vld [vmem:[%s4916_s6 + $0x80] sm:$0xff]  ;;  %v2775_v30 = vpack.c.bf16 %v134_v27, %v133_v26  ;;  %v106_v34 = vld [vmem:[%s4916_s6 + $0xa8] sm:$0xff]  ;;  %v108_v36 = vld [vmem:[%s4916_s6 + $0xb8] sm:$0xff] }
  0x19   :  { %202 = vmatpush1.bf16.msra.mxu0 %v185_v14  ;;  %v117_v31 = vld [vmem:[%s4917_s28] sm:$0xff]  ;;  %v118_v35 = vld [vmem:[%s4917_s28 + $0x8] sm:$0xff]  ;;  %v135_v38 = vld [vmem:[%s4917_s28 + $0x90] sm:$0xff]  ;;  %v191_v43 = vpack.c.bf16 %v103_v33, %v101_v29  ;;  %v194_v47 = vpack.c.bf16 %v108_v36, %v106_v34 }
  0x1a   :  { %203 = vmatprep.subr.bf16.mxu0 %v188_v15  ;;  %2776 = vmatprep.subr.bf16.mxu1 %v2775_v30  ;;  %v2777_v37 = vpack.c.bf16 %v118_v35, %v117_v31  ;;  %v136_v39 = vld [vmem:[%s4917_s28 + $0x98] sm:$0xff]  ;;  %v119_v41 = vld [vmem:[%s4917_s28 + $0x10] sm:$0xff]  ;;  %v105_v44 = vld [vmem:[%s4916_s6 + $0xa0] sm:$0xff] }
  0x1b   :  { %v2779_v40 = vpack.c.bf16 %v136_v39, %v135_v38  ;;  %v120_v42 = vld [vmem:[%s4917_s28 + $0x18] sm:$0xff]  ;;  %v137_v46 = vld [vmem:[%s4917_s28 + $0xa0] sm:$0xff]  ;;  %v107_v48 = vld [vmem:[%s4916_s6 + $0xb0] sm:$0xff] }
  0x1c   :  { %2778 = vmatpush3.bf16.msra.mxu1 %v2777_v37  ;;  %v2781_v45 = vpack.c.bf16 %v120_v42, %v119_v41  ;;  %v110_v49 = vld [vmem:[%s4916_s6 + $0xc8] sm:$0xff]  ;;  %v112_v51 = vld [vmem:[%s4916_s6 + $0xd8] sm:$0xff]  ;;  %v121_v53 = vld [vmem:[%s4917_s28 + $0x20] sm:$0xff]  ;;  %v193_v57 = vpack.c.bf16 %v107_v48, %v105_v44 }
  0x1d   :  { %204 = vmatpush1.bf16.msra.mxu0 %v187_v20  ;;  %2780 = vmatprep.subr.bf16.mxu1 %v2779_v40  ;;  %v138_v50 = vld [vmem:[%s4917_s28 + $0xa8] sm:$0xff]  ;;  %v139_v55 = vld [vmem:[%s4917_s28 + $0xb0] sm:$0xff]  ;;  %v140_v56 = vld [vmem:[%s4917_s28 + $0xb8] sm:$0xff]  ;;  %v196_v61 = vpack.c.bf16 %v112_v51, %v110_v49 }
  0x1e   :  { %205 = vmatprep.subr.bf16.mxu0 %v190_v21  ;;  %v2783_v52 = vpack.c.bf16 %v138_v50, %v137_v46  ;;  %v122_v54 = vld [vmem:[%s4917_s28 + $0x28] sm:$0xff]  ;;  %v109_v58 = vld [vmem:[%s4916_s6 + $0xc0] sm:$0xff]  ;;  %v111_v59 = vld [vmem:[%s4916_s6 + $0xd0] sm:$0xff]  ;;  %v2787_v63 = vpack.c.bf16 %v140_v56, %v139_v55 }
  0x1f   :  { %v2785_v60 = vpack.c.bf16 %v122_v54, %v121_v53  ;;  %v114_v62 = vld [vmem:[%s4916_s6 + $0xe8] sm:$0xff]  ;;  %v123_v0 = vld [vmem:[%s4917_s28 + $0x30] sm:$0xff]  ;;  %v124_v1 = vld [vmem:[%s4917_s28 + $0x38] sm:$0xff]  ;;  %v195_v5 = vpack.c.bf16 %v111_v59, %v109_v58 }
  0x20   :  { %2782 = vmatpush3.bf16.msra.mxu1 %v2781_v45  ;;  %v116_v2 = vld [vmem:[%s4916_s6 + $0xf8] sm:$0xff]  ;;  %v141_v3 = vld [vmem:[%s4917_s28 + $0xc0] sm:$0xff]  ;;  %v142_v4 = vld [vmem:[%s4917_s28 + $0xc8] sm:$0xff]  ;;  %v2789_v9 = vpack.c.bf16 %v124_v1, %v123_v0 }
  0x21   :  { %206 = vmatpush1.bf16.msra.mxu0 %v189_v28  ;;  %2784 = vmatprep.subr.bf16.mxu1 %v2783_v52  ;;  %v113_v6 = vld [vmem:[%s4916_s6 + $0xe0] sm:$0xff]  ;;  %v115_v8 = vld [vmem:[%s4916_s6 + $0xf0] sm:$0xff]  ;;  %v198_v10 = vpack.c.bf16 %v116_v2, %v114_v62  ;;  %v2791_v12 = vpack.c.bf16 %v142_v4, %v141_v3  ;;  %v126_v14 = vld [vmem:[%s4917_s28 + $0x48] sm:$0xff] }
  0x22   :  { %207 = vmatprep.subr.bf16.mxu0 %v192_v32  ;;  %v165_v11 = vld [vmem:[%s4918_s4 + $0x80] sm:$0xff]  ;;  %v166_v15 = vld [vmem:[%s4918_s4 + $0x88] sm:$0xff]  ;;  %v143_v16 = vld [vmem:[%s4917_s28 + $0xd0] sm:$0xff]  ;;  %v197_v19 = vpack.c.bf16 %v115_v8, %v113_v6 }
  0x23   :  { %v125_v13 = vld [vmem:[%s4917_s28 + $0x40] sm:$0xff]  ;;  %v144_v17 = vld [vmem:[%s4917_s28 + $0xd8] sm:$0xff]  ;;  %v84_v20 = vld [vmem:[%s4919_s27 + $0x8] sm:$0xff]  ;;  %v2807_v24 = vpack.c.bf16 %v166_v15, %v165_v11 }
  0x24   :  { %2786 = vmatpush3.bf16.msra.mxu1 %v2785_v60  ;;  %v83_v18 = vld [vmem:[%s4919_s27] sm:$0xff]  ;;  %v150_v22 = vld [vmem:[%s4918_s4 + $0x8] sm:$0xff]  ;;  %v2793_v23 = vpack.c.bf16 %v126_v14, %v125_v13  ;;  %v167_v25 = vld [vmem:[%s4918_s4 + $0x90] sm:$0xff]  ;;  %v2795_v26 = vpack.c.bf16 %v144_v17, %v143_v16 }
  0x25   :  { %208 = vmatpush1.bf16.msra.mxu0 %v191_v43  ;;  %2788 = vmatprep.subr.bf16.mxu1 %v2787_v63  ;;  %v149_v21 = vld [vmem:[%s4918_s4] sm:$0xff]  ;;  %v127_v27 = vld [vmem:[%s4917_s28 + $0x50] sm:$0xff]  ;;  %v128_v28 = vld [vmem:[%s4917_s28 + $0x58] sm:$0xff]  ;;  %v182_v32 = vpack.c.bf16 %v84_v20, %v83_v18 }
  0x26   :  { %209 = vmatprep.subr.bf16.mxu0 %v194_v47  ;;  %v168_v29 = vld [vmem:[%s4918_s4 + $0x98] sm:$0xff]  ;;  %v145_v30 = vld [vmem:[%s4917_s28 + $0xe0] sm:$0xff]  ;;  %v146_v31 = vld [vmem:[%s4917_s28 + $0xe8] sm:$0xff] }
  0x28   :  { %2790 = vmatpush3.bf16.msra.mxu1 %v2789_v9 }
  0x29   :  { %210 = vmatpush1.bf16.msra.mxu0 %v193_v57  ;;  %2792 = vmatprep.subr.bf16.mxu1 %v2791_v12 }
  0x2a   :  { %211 = vmatprep.subr.bf16.mxu0 %v196_v61 }
  0x2d   :  { %212 = vmatpush1.bf16.msra.mxu0 %v195_v5 }
  0x2e   :  { %213 = vmatprep.subr.bf16.mxu0 %v198_v10 }
  0x2f   :  { %31 = vsyncpa [#allocation3], 0  ;;  %v2809_v33 = vpack.c.bf16 %v150_v22, %v149_v21  ;;  %v151_v34 = vld [vmem:[%s4918_s4 + $0x10] sm:$0xff]  ;;  %v152_v35 = vld [vmem:[%s4918_s4 + $0x18] sm:$0xff]  ;;  %2794 = vmatpush3.bf16.msra.mxu1 %v2793_v23  ;;  %v2797_v36 = vpack.c.bf16 %v128_v28, %v127_v27  ;;  %v2811_v37 = vpack.c.bf16 %v168_v29, %v167_v25  ;;  %v2799_v39 = vpack.c.bf16 %v146_v31, %v145_v30  ;;  %s4920_s2 = sld [smem:[#allocation6_spill]]  ;;  %s4921_s26 = sld [smem:[#allocation11_spill]] }
  0x30   :  { %v169_v38 = vld [vmem:[%s4918_s4 + $0xa0] sm:$0xff]  ;;  %2796 = vmatprep.subr.bf16.mxu1 %v2795_v26  ;;  %v130_v41 = vld [vmem:[%s4917_s28 + $0x68] sm:$0xff]  ;;  %v147_v43 = vld [vmem:[%s4917_s28 + $0xf0] sm:$0xff]  ;;  %v2813_v45 = vpack.c.bf16 %v152_v35, %v151_v34  ;;  %vm450_vm2 = vcmask 130048   ;;  %s4922_s27 = sld [smem:[#allocation12_spill]]  ;;  %s4923_s6 = sld [smem:[#allocation10_spill]] }
  0x31   :  { %214 = vmatpush1.bf16.msra.mxu0 %v197_v19  ;;  %v129_v40 = vld [vmem:[%s4917_s28 + $0x60] sm:$0xff]  ;;  %v170_v42 = vld [vmem:[%s4918_s4 + $0xa8] sm:$0xff]  ;;  %v148_v44 = vld [vmem:[%s4917_s28 + $0xf8] sm:$0xff]  ;;  %s4924_s7 = sld [smem:[#allocation13_spill]]  ;;  %s4925_s1 = sld [smem:[#allocation14_spill]]  ;;  %vm3172_vm11 = vmmov 0  }
  0x32   :  { %2808 = vmatprep.subr.bf16.mxu0 %v2807_v24  ;;  %v2801_v46 = vpack.c.bf16 %v130_v41, %v129_v40  ;;  %v2815_v47 = vpack.c.bf16 %v170_v42, %v169_v38  ;;  %v153_v48 = vld [vmem:[%s4918_s4 + $0x20] sm:$0xff]  ;;  %v154_v49 = vld [vmem:[%s4918_s4 + $0x28] sm:$0xff]  ;;  %v2803_v50 = vpack.c.bf16 %v148_v44, %v147_v43  ;;  %v171_v51 = vld [vmem:[%s4918_s4 + $0xb0] sm:$0xff]  ;;  %v434_v40 = vlaneseq }
  0x33   :  { %2798 = vmatpush3.bf16.msra.mxu1 %v2797_v36  ;;  %v172_v52 = vld [vmem:[%s4918_s4 + $0xb8] sm:$0xff]  ;;  %v2817_v53 = vpack.c.bf16 %v154_v49, %v153_v48  ;;  %v155_v55 = vld [vmem:[%s4918_s4 + $0x30] sm:$0xff]  ;;  %v173_v57 = vld [vmem:[%s4918_s4 + $0xc0] sm:$0xff]  ;;  %vm2219_vm12 = vcmask 8192  }
  0x34   :  { %232 = vmatmul.mubr.bf16.vlgmr.msra.gmra.mrb[0].mxu0 %v182_v32  ;;  %2800 = vmatprep.subr.bf16.mxu1 %v2799_v39  ;;  %v2819_v54 = vpack.c.bf16 %v172_v52, %v171_v51  ;;  %v156_v56 = vld [vmem:[%s4918_s4 + $0x38] sm:$0xff]  ;;  %v174_v58 = vld [vmem:[%s4918_s4 + $0xc8] sm:$0xff]  ;;  %v157_v61 = vld [vmem:[%s4918_s4 + $0x40] sm:$0xff]  ;;  %v3603_v41 = vshrl.u32 %v434_v40, 7 }
  0x35   :  { %2810 = vmatpush3.bf16.msra.mxu0 %v2809_v33  ;;  %v2821_v59 = vpack.c.bf16 %v156_v56, %v155_v55  ;;  %v2823_v60 = vpack.c.bf16 %v174_v58, %v173_v57  ;;  %v158_v62 = vld [vmem:[%s4918_s4 + $0x48] sm:$0xff]  ;;  %v175_v63 = vld [vmem:[%s4918_s4 + $0xd0] sm:$0xff]  ;;  %v176_v0 = vld [vmem:[%s4918_s4 + $0xd8] sm:$0xff] }
  0x36   :  { %2812 = vmatprep.subr.bf16.mxu0 %v2811_v37  ;;  %v2825_v1 = vpack.c.bf16 %v158_v62, %v157_v61  ;;  %v2827_v2 = vpack.c.bf16 %v176_v0, %v175_v63  ;;  %v159_v3 = vld [vmem:[%s4918_s4 + $0x50] sm:$0xff]  ;;  %v160_v4 = vld [vmem:[%s4918_s4 + $0x58] sm:$0xff]  ;;  %v177_v5 = vld [vmem:[%s4918_s4 + $0xe0] sm:$0xff]  ;;  %v3606_v42 = vsub.s32 0, %v3603_v41 }
  0x37   :  { %2802 = vmatpush3.bf16.msra.mxu1 %v2801_v46  ;;  %v178_v6 = vld [vmem:[%s4918_s4 + $0xe8] sm:$0xff]  ;;  %v2829_v8 = vpack.c.bf16 %v160_v4, %v159_v3  ;;  %v161_v10 = vld [vmem:[%s4918_s4 + $0x60] sm:$0xff]  ;;  %v179_v12 = vld [vmem:[%s4918_s4 + $0xf0] sm:$0xff] }
  0x38   :  { %2804 = vmatprep.subr.bf16.mxu1 %v2803_v50  ;;  %v2831_v9 = vpack.c.bf16 %v178_v6, %v177_v5  ;;  %v162_v11 = vld [vmem:[%s4918_s4 + $0x68] sm:$0xff]  ;;  %v180_v13 = vld [vmem:[%s4918_s4 + $0xf8] sm:$0xff]  ;;  %v131_v16 = vld [vmem:[%s4917_s28 + $0x70] sm:$0xff] }
  0x39   :  { %2814 = vmatpush3.bf16.msra.mxu0 %v2813_v45  ;;  %v2833_v14 = vpack.c.bf16 %v162_v11, %v161_v10  ;;  %v2835_v15 = vpack.c.bf16 %v180_v13, %v179_v12  ;;  %v132_v17 = vld [vmem:[%s4917_s28 + $0x78] sm:$0xff]  ;;  %v163_v18 = vld [vmem:[%s4918_s4 + $0x70] sm:$0xff]  ;;  %v3612_v46 = vld [vmem:[%s4920_s2] sm:$0xff] }
  0x3a   :  { %2816 = vmatprep.subr.bf16.mxu0 %v2815_v47  ;;  %v2805_v19 = vpack.c.bf16 %v132_v17, %v131_v16  ;;  %v164_v20 = vld [vmem:[%s4918_s4 + $0x78] sm:$0xff]  ;;  %v3617_v49 = vld [vmem:[%s4920_s2 + $0x8] sm:$0xff]  ;;  %vm446_vm1 = vcmp.gt.f32.partialorder %v3612_v46, 0.0 }
  0x3b   :  { %v2837_v21 = vpack.c.bf16 %v164_v20, %v163_v18  ;;  %vm447_vm4 = vcmp.gt.f32.partialorder %v3617_v49, 0.0  ;;  %v540_v5 = vld [vmem:[%s4921_s26 + $0x8] sm:$0xff]  ;;  %v542_v6 = vld [vmem:[%s4921_s26 + $0x18] sm:$0xff]  ;;  %v1956_v49 = vld [vmem:[%s4890_s18] sm:$0xff] }
  0x3c   :  { %2806 = vmatpush3.bf16.msra.mxu1 %v2805_v19  ;;  %v544_v17 = vld [vmem:[%s4921_s26 + $0x28] sm:$0xff]  ;;  %v546_v18 = vld [vmem:[%s4921_s26 + $0x38] sm:$0xff] }
  0x3d   :  { %2818 = vmatpush3.bf16.msra.mxu0 %v2817_v53 }
  0x3e   :  { %2820 = vmatprep.subr.bf16.mxu0 %v2819_v54 }
  0x41   :  { %2822 = vmatpush3.bf16.msra.mxu0 %v2821_v59 }
  0x42   :  { %2824 = vmatprep.subr.bf16.mxu0 %v2823_v60 }
  0x45   :  { %2826 = vmatpush3.bf16.msra.mxu0 %v2825_v1 }
  0x46   :  { %2828 = vmatprep.subr.bf16.mxu0 %v2827_v2 }
  0x49   :  { %2830 = vmatpush3.bf16.msra.mxu0 %v2829_v8  ;;  %v671_v8 = vpack.c.bf16 %v542_v6, %v540_v5  ;;  %v571_v6 = vld [vmem:[%s4921_s26 + $0x100] sm:$0xff] }
  0x4a   :  { %2832 = vmatprep.subr.bf16.mxu0 %v2831_v9 }
  0x4d   :  { %2834 = vmatpush3.bf16.msra.mxu0 %v2833_v14  ;;  %v539_v14 = vld [vmem:[%s4921_s26] sm:$0xff] }
  0x4e   :  { %2836 = vmatprep.subr.bf16.mxu0 %v2835_v15  ;;  %v541_v15 = vld [vmem:[%s4921_s26 + $0x10] sm:$0xff] }
  0x51   :  { %2838 = vmatpush3.bf16.msra.mxu0 %v2837_v21  ;;  %v670_v21 = vpack.c.bf16 %v541_v15, %v539_v14  ;;  %v577_v14 = vld [vmem:[%s4921_s26 + $0x130] sm:$0xff]  ;;  %v580_v15 = vld [vmem:[%s4921_s26 + $0x148] sm:$0xff] }
 0x107   :  { %v233_v22 = vpop.f32.mrb[0].mxu0 }
 0x108   :  { %v235_v23 = vpop.f32.mrb[1].mxu0 }
 0x109   :  { %v237_v24 = vpop.f32.mrb[2].mxu0  ;;  %306 = vmatprep.mubr.f32.mxu1 %v235_v23  ;;  %381 = vmatprep.mubr.f32.mxu0 %v235_v23 }
 0x10a   :  { %v476_v25 = vpack.c.bf16 %v237_v24, %v233_v22  ;;  %v239_v26 = vpop.f32.mrb[3].mxu0  ;;  %307 = vmatmul.mubr.f32.vlgmr.msra.gmra.mrb[0].mxu1 %v233_v22  ;;  %382 = vmatmul.mubr.f32.vlgmr.msra.gmra.mrb[4].mxu0 %v233_v22 }
 0x10b   :  { %v477_v27 = vpack.c.bf16 %v239_v26, %v235_v23  ;;  %311 = vmatprep.mubr.f32.mxu1 %v239_v26  ;;  %386 = vmatprep.mubr.f32.mxu0 %v239_v26  ;;  %v673_v23 = vpack.c.bf16 %v546_v18, %v544_v17  ;;  %v548_v26 = vld [vmem:[%s4921_s26 + $0x48] sm:$0xff] }
 0x10d   :  { %492 = vmatprep.subr.bf16.mxu1 %v477_v27  ;;  %v550_v27 = vld [vmem:[%s4921_s26 + $0x58] sm:$0xff] }
 0x10e   :  { %312 = vmatmul.mubr.f32.gmra.mrb[2].mxu1 %v237_v24  ;;  %387 = vmatmul.mubr.f32.gmra.mrb[6].mxu0 %v237_v24  ;;  %v543_v24 = vld [vmem:[%s4921_s26 + $0x20] sm:$0xff] }
 0x10f   :  { %493 = vmatpush1.bf16.msra.mxu1 %v476_v25  ;;  %524 = vmatprep.mubr.bf16.mxu1 %v3170_v7  ;;  %v545_v25 = vld [vmem:[%s4921_s26 + $0x30] sm:$0xff] }
 0x110   :  { %702 = vmatprep.subr.bf16.mxu1 %v671_v8  ;;  %v573_v8 = vld [vmem:[%s4921_s26 + $0x110] sm:$0xff] }
 0x1dd   :  { %v2287_v28 = vpop.f32.mrb[0].mxu1  ;;  %v2325_v29 = vpop.f32.mrb[4].mxu0 }
 0x1de   :  { %v2288_v30 = vpop.f32.mrb[1].mxu1  ;;  %v2326_v31 = vpop.f32.mrb[5].mxu0 }
 0x1df   :  { %v2327_v32 = vadd.f32 %v2326_v31, %v2325_v29  ;;  %v2289_v33 = vadd.f32 %v2288_v30, %v2287_v28  ;;  %v672_v28 = vpack.c.bf16 %v545_v25, %v543_v24  ;;  %v675_v29 = vpack.c.bf16 %v550_v27, %v548_v26  ;;  %v547_v30 = vld [vmem:[%s4921_s26 + $0x40] sm:$0xff]  ;;  %v549_v31 = vld [vmem:[%s4921_s26 + $0x50] sm:$0xff]  ;;  %v588_v27 = vld [vmem:[%s4921_s26 + $0x188] sm:$0xff] }
 0x1e0   :  { %v583_v25 = vld [vmem:[%s4921_s26 + $0x160] sm:$0xff]  ;;  %v585_v26 = vld [vmem:[%s4921_s26 + $0x170] sm:$0xff] }
 0x1e1   :  { %392 = vxpose.xlu1.b32.start [1/2] (short) (narrow) %v2289_v33, 8  ;;  %v2328_v34 = vpop.f32.mrb[6].mxu0  ;;  %426 = vperm.xlu0 %3108, %v2327_v32   ;;  %v2290_v35 = vpop.f32.mrb[2].mxu1  ;;  %v552_v32 = vld [vmem:[%s4921_s26 + $0x68] sm:$0xff]  ;;  %v554_v33 = vld [vmem:[%s4921_s26 + $0x78] sm:$0xff] }
 0x1e2   :  { %v2291_v36 = vpop.f32.mrb[3].mxu1  ;;  %v2329_v37 = vpop.f32.mrb[7].mxu0 }
 0x1e3   :  { %v2292_v38 = vadd.f32 %v2291_v36, %v2290_v35  ;;  %v2330_v39 = vadd.f32 %v2329_v37, %v2328_v34  ;;  %v674_v34 = vpack.c.bf16 %v549_v31, %v547_v30  ;;  %v677_v35 = vpack.c.bf16 %v554_v33, %v552_v32  ;;  %v551_v36 = vld [vmem:[%s4921_s26 + $0x60] sm:$0xff]  ;;  %v553_v37 = vld [vmem:[%s4921_s26 + $0x70] sm:$0xff]  ;;  %v592_v33 = vld [vmem:[%s4921_s26 + $0x1a8] sm:$0xff] }
 0x1e4   :  { %v676_v40 = vpack.c.bf16 %v553_v37, %v551_v36  ;;  %v587_v31 = vld [vmem:[%s4921_s26 + $0x180] sm:$0xff]  ;;  %v589_v32 = vld [vmem:[%s4921_s26 + $0x190] sm:$0xff] }
 0x1e5   :  { %431 = vperm.xlu0 %3108, %v2330_v39   ;;  %393 = vxpose.xlu1.b32.end [2/2] (short) (narrow) %v2292_v38, 8  ;;  %v556_v38 = vld [vmem:[%s4921_s26 + $0x88] sm:$0xff]  ;;  %v558_v39 = vld [vmem:[%s4921_s26 + $0x98] sm:$0xff]  ;;  %v591_v37 = vld [vmem:[%s4921_s26 + $0x1a0] sm:$0xff] }
 0x203   :  { %3109 = vset.pattern.permute.xlu1 %v3170_v7 }
 0x260   :  { %v427_v43 = vpop.permute.xlu0 %426 }
 0x261   :  { %v408_v44 = vpop.trf.xlu1 }
 0x262   :  { %v437_v45 = vrot.slane %v408_v44, %v3606_v42  ;;  %v555_v44 = vld [vmem:[%s4921_s26 + $0x80] sm:$0xff] }
 0x264   :  { %v438_v47 = vadd.f32 %v437_v45, %v427_v43  ;;  %v432_v48 = vpop.permute.xlu0 %431  ;;  %v679_v43 = vpack.c.bf16 %v558_v39, %v556_v38  ;;  %v593_v38 = vld [vmem:[%s4921_s26 + $0x1b0] sm:$0xff] }
 0x265   :  { %v439_v50 = vadd.f32 %v437_v45, %v432_v48  ;;  %v557_v45 = vld [vmem:[%s4921_s26 + $0x90] sm:$0xff]  ;;  %v562_v48 = vld [vmem:[%s4921_s26 + $0xb8] sm:$0xff]  ;;  %v696_v39 = vpack.c.bf16 %v593_v38, %v591_v37 }
 0x266   :  { %vm440_vm0 = vcmp.gt.f32.partialorder %v438_v47, 0.0  ;;  %v442_v51 = vmul.f32 0.2, %v438_v47  ;;  %v617_v38 = vld [vmem:[%s4922_s27 + $0x70] sm:$0xff] }
 0x267   :  { %v443_v52 = vmul.f32 0.2, %v439_v50  ;;  %vm441_vm3 = vcmp.gt.f32.partialorder %v439_v50, 0.0 }
 0x268   :  { %v444_v53 = vsel %vm440_vm0, %v438_v47, %v442_v51  ;;  %v560_v47 = vld [vmem:[%s4921_s26 + $0xa8] sm:$0xff] }
 0x269   :  { %v448_v54 = vsel %vm446_vm1, %v444_v53, -1e+30  ;;  %v445_v55 = vsel %vm441_vm3, %v439_v50, %v443_v52  ;;  %v678_v50 = vpack.c.bf16 %v557_v45, %v555_v44  ;;  %v681_v51 = vpack.c.bf16 %v562_v48, %v560_v47  ;;  %v559_v52 = vld [vmem:[%s4921_s26 + $0xa0] sm:$0xff]  ;;  %v561_v53 = vld [vmem:[%s4921_s26 + $0xb0] sm:$0xff] }
 0x26a   :  { %v451_v56 = vsel %vm450_vm2, %v448_v54, -inf  ;;  %v449_v57 = vsel %vm447_vm4, %v445_v55, -1e+30  ;;  %v566_v55 = vld [vmem:[%s4921_s26 + $0xd8] sm:$0xff]  ;;  %v595_v45 = vld [vmem:[%s4921_s26 + $0x1c0] sm:$0xff]  ;;  %v597_v47 = vld [vmem:[%s4921_s26 + $0x1d0] sm:$0xff] }
 0x26b   :  { %452 = vmax.xlane.f32.xlu0 %v451_v56  ;;  %v454_v58 = vsel %vm450_vm2, %v449_v57, -inf  ;;  %v680_v56 = vpack.c.bf16 %v561_v53, %v559_v52  ;;  %v698_v48 = vpack.c.bf16 %v597_v47, %v595_v45  ;;  %v599_v53 = vld [vmem:[%s4921_s26 + $0x1e0] sm:$0xff] }
 0x26c   :  { %455 = vmax.xlane.f32.xlu1 %v454_v58  ;;  %v563_v58 = vld [vmem:[%s4921_s26 + $0xc0] sm:$0xff] }
 0x2f8   :  { %v453_v59 = vpop.xlane.xlu0 %452 }
 0x2f9   :  { %v457_v60 = vsub.f32 %v448_v54, %v453_v59  ;;  %v456_v61 = vpop.xlane.xlu1 %455  ;;  %v564_v54 = vld [vmem:[%s4921_s26 + $0xc8] sm:$0xff]  ;;  %v565_v59 = vld [vmem:[%s4921_s26 + $0xd0] sm:$0xff] }
 0x2fa   :  { %v458_v62 = vsub.f32 %v449_v57, %v456_v61  ;;  %v683_v57 = vpack.c.bf16 %v566_v55, %v564_v54  ;;  %v570_v61 = vld [vmem:[%s4921_s26 + $0xf8] sm:$0xff]  ;;  %v601_v54 = vld [vmem:[%s4921_s26 + $0x1f0] sm:$0xff] }
 0x2fb   :  { %v459_v63 = vmul.f32 1.442695, %v457_v60  ;;  %v568_v60 = vld [vmem:[%s4921_s26 + $0xe8] sm:$0xff]  ;;  %v700_v55 = vpack.c.bf16 %v601_v54, %v599_v53 }
 0x2fc   :  { %v461_v0 = vmul.f32 1.442695, %v458_v62  ;;  %v682_v62 = vpack.c.bf16 %v565_v59, %v563_v58  ;;  %v603_v58 = vld [vmem:[%s4922_s27] sm:$0xff] }
 0x2fd   :  { %3110 = vpow2.f32 %v459_v63  ;;  %v685_v63 = vpack.c.bf16 %v570_v61, %v568_v60  ;;  %v604_v60 = vld [vmem:[%s4922_s27 + $0x8] sm:$0xff]  ;;  %v621_v61 = vld [vmem:[%s4922_s27 + $0x90] sm:$0xff] }
 0x2fe   :  { %3112 = vpow2.f32 %v461_v0  ;;  %v567_v0 = vld [vmem:[%s4921_s26 + $0xe0] sm:$0xff] }
 0x307   :  { %v3111_v1 = vpop.eup %3110 }
 0x308   :  { %v463_v2 = vsel %vm450_vm2, %v3111_v1, 0.0  ;;  %v3113_v3 = vpop.eup %3112 }
 0x309   :  { %464 = vadd.xlane.f32.xlu0 %v463_v2  ;;  %v466_v4 = vsel %vm450_vm2, %v3113_v3, 0.0  ;;  %v572_v2 = vld [vmem:[%s4921_s26 + $0x108] sm:$0xff] }
 0x30d   :  { %467 = vadd.xlane.f32.xlu0 %v466_v4 }
 0x396   :  { %v465_v9 = vpop.xlane.xlu0 %464 }
 0x397   :  { %v469_v10 = vmax.f32 %v465_v9, 1e-30  ;;  %v576_v9 = vld [vmem:[%s4921_s26 + $0x128] sm:$0xff] }
 0x399   :  { %3114 = vrcp.f32 %v469_v10  ;;  %v578_v10 = vld [vmem:[%s4921_s26 + $0x138] sm:$0xff] }
 0x39a   :  { %v468_v11 = vpop.xlane.xlu0 %467 }
 0x39b   :  { %v470_v12 = vmax.f32 %v468_v11, 1e-30  ;;  %v686_v11 = vpack.c.bf16 %v573_v8, %v571_v6  ;;  %v607_v8 = vld [vmem:[%s4922_s27 + $0x20] sm:$0xff] }
 0x39d   :  { %3116 = vrcp.f32 %v470_v12  ;;  %v689_v12 = vpack.c.bf16 %v578_v10, %v576_v9  ;;  %v608_v9 = vld [vmem:[%s4922_s27 + $0x28] sm:$0xff]  ;;  %v625_v10 = vld [vmem:[%s4922_s27 + $0xb0] sm:$0xff] }
 0x3a3   :  { %v3115_v13 = vpop.eup %3114 }
 0x3a4   :  { %v473_v19 = vmul.f32 %v3115_v13, %v3111_v1  ;;  %v569_v1 = vld [vmem:[%s4921_s26 + $0xf0] sm:$0xff]  ;;  %v575_v13 = vld [vmem:[%s4921_s26 + $0x120] sm:$0xff] }
 0x3a5   :  { %v684_v4 = vpack.c.bf16 %v569_v1, %v567_v0  ;;  %v688_v17 = vpack.c.bf16 %v577_v14, %v575_v13  ;;  %v605_v1 = vld [vmem:[%s4922_s27 + $0x10] sm:$0xff] }
 0x3a6   :  { %v609_v14 = vld [vmem:[%s4922_s27 + $0x30] sm:$0xff] }
 0x3a7   :  { %v3117_v16 = vpop.eup %3116 }
 0x3a8   :  { %v474_v20 = vmul.f32 %v3117_v16, %v3113_v3  ;;  %v574_v3 = vld [vmem:[%s4921_s26 + $0x118] sm:$0xff] }
 0x3a9   :  { %v687_v5 = vpack.c.bf16 %v574_v3, %v572_v2  ;;  %v582_v16 = vld [vmem:[%s4921_s26 + $0x158] sm:$0xff]  ;;  %v623_v3 = vld [vmem:[%s4922_s27 + $0xa0] sm:$0xff] }
 0x3aa   :  { %v475_v22 = vpack.c.bf16 %v474_v20, %v473_v19  ;;  %v691_v18 = vpack.c.bf16 %v582_v16, %v580_v15  ;;  %v579_v19 = vld [vmem:[%s4921_s26 + $0x140] sm:$0xff]  ;;  %v581_v20 = vld [vmem:[%s4921_s26 + $0x150] sm:$0xff]  ;;  %v606_v2 = vld [vmem:[%s4922_s27 + $0x18] sm:$0xff] }
 0x3ab   :  { %v610_v15 = vld [vmem:[%s4922_s27 + $0x38] sm:$0xff]  ;;  %v627_v16 = vld [vmem:[%s4922_s27 + $0xc0] sm:$0xff] }
 0x3ac   :  { %2250 = vmatmul.mubr.msk.bf16.vlgmr.msra.gmra.mrb[4].mxu1 %vm450_vm2, %v475_v22  ;;  %v586_v22 = vld [vmem:[%s4921_s26 + $0x178] sm:$0xff] }
 0x3ad   :  { %703 = vmatpush1.bf16.msra.mxu1 %v670_v21  ;;  %v584_v21 = vld [vmem:[%s4921_s26 + $0x168] sm:$0xff] }
 0x3ae   :  { %704 = vmatprep.subr.bf16.mxu1 %v673_v23  ;;  %v690_v23 = vpack.c.bf16 %v581_v20, %v579_v19  ;;  %v693_v24 = vpack.c.bf16 %v586_v22, %v584_v21  ;;  %v611_v20 = vld [vmem:[%s4922_s27 + $0x40] sm:$0xff]  ;;  %v612_v21 = vld [vmem:[%s4922_s27 + $0x48] sm:$0xff]  ;;  %v629_v22 = vld [vmem:[%s4922_s27 + $0xd0] sm:$0xff] }
 0x3b1   :  { %705 = vmatpush1.bf16.msra.mxu1 %v672_v28  ;;  %v590_v28 = vld [vmem:[%s4921_s26 + $0x198] sm:$0xff] }
 0x3b2   :  { %706 = vmatprep.subr.bf16.mxu1 %v675_v29  ;;  %v692_v29 = vpack.c.bf16 %v585_v26, %v583_v25  ;;  %v695_v30 = vpack.c.bf16 %v590_v28, %v588_v27  ;;  %v613_v26 = vld [vmem:[%s4922_s27 + $0x50] sm:$0xff]  ;;  %v614_v27 = vld [vmem:[%s4922_s27 + $0x58] sm:$0xff]  ;;  %v631_v28 = vld [vmem:[%s4922_s27 + $0xe0] sm:$0xff] }
 0x3b5   :  { %707 = vmatpush1.bf16.msra.mxu1 %v674_v34  ;;  %v594_v34 = vld [vmem:[%s4921_s26 + $0x1b8] sm:$0xff] }
 0x3b6   :  { %708 = vmatprep.subr.bf16.mxu1 %v677_v35  ;;  %v694_v35 = vpack.c.bf16 %v589_v32, %v587_v31  ;;  %v697_v36 = vpack.c.bf16 %v594_v34, %v592_v33  ;;  %v615_v32 = vld [vmem:[%s4922_s27 + $0x60] sm:$0xff]  ;;  %v616_v33 = vld [vmem:[%s4922_s27 + $0x68] sm:$0xff]  ;;  %v633_v34 = vld [vmem:[%s4922_s27 + $0xf0] sm:$0xff] }
 0x3b9   :  { %709 = vmatpush1.bf16.msra.mxu1 %v676_v40  ;;  %v596_v40 = vld [vmem:[%s4921_s26 + $0x1c8] sm:$0xff] }
 0x3ba   :  { %710 = vmatprep.subr.bf16.mxu1 %v679_v43  ;;  %v598_v43 = vld [vmem:[%s4921_s26 + $0x1d8] sm:$0xff] }
 0x3bb   :  { %v699_v44 = vpack.c.bf16 %v598_v43, %v596_v40  ;;  %v181_v43 = vld [vmem:[%s4923_s6] sm:$0x3] }
 0x3bc   :  { %v482_v45 = vrot.slane %v181_v43, %v3606_v42 }
 0x3bd   :  { %711 = vmatpush1.bf16.msra.mxu1 %v678_v50  ;;  %v600_v50 = vld [vmem:[%s4921_s26 + $0x1e8] sm:$0xff] }
 0x3be   :  { %712 = vmatprep.subr.bf16.mxu1 %v681_v51  ;;  %v602_v51 = vld [vmem:[%s4921_s26 + $0x1f8] sm:$0xff] }
 0x3bf   :  { %v701_v52 = vpack.c.bf16 %v602_v51, %v600_v50 }
 0x3c1   :  { %713 = vmatpush1.bf16.msra.mxu1 %v680_v56  ;;  %v619_v56 = vld [vmem:[%s4922_s27 + $0x80] sm:$0xff] }
 0x3c2   :  { %714 = vmatprep.subr.bf16.mxu1 %v683_v57  ;;  %v620_v57 = vld [vmem:[%s4922_s27 + $0x88] sm:$0xff] }
 0x3c3   :  { %v2839_v59 = vpack.c.bf16 %v620_v57, %v619_v56 }
 0x3c5   :  { %715 = vmatpush1.bf16.msra.mxu1 %v682_v62  ;;  %v622_v62 = vld [vmem:[%s4922_s27 + $0x98] sm:$0xff]  ;;  %2840 = vmatprep.subr.bf16.mxu0 %v2839_v59 }
 0x3c6   :  { %716 = vmatprep.subr.bf16.mxu1 %v685_v63  ;;  %v2841_v63 = vpack.c.bf16 %v604_v60, %v603_v58  ;;  %v2843_v0 = vpack.c.bf16 %v622_v62, %v621_v61 }
 0x3c8   :  { %2842 = vmatpush3.bf16.msra.mxu0 %v2841_v63  ;;  %v652_v63 = vld [vmem:[%s4924_s7 + $0x88] sm:$0xff] }
 0x3c9   :  { %717 = vmatpush1.bf16.msra.mxu1 %v684_v4  ;;  %v624_v4 = vld [vmem:[%s4922_s27 + $0xa8] sm:$0xff]  ;;  %2844 = vmatprep.subr.bf16.mxu0 %v2843_v0 }
 0x3ca   :  { %718 = vmatprep.subr.bf16.mxu1 %v687_v5  ;;  %v2845_v5 = vpack.c.bf16 %v606_v2, %v605_v1  ;;  %v2847_v6 = vpack.c.bf16 %v624_v4, %v623_v3  ;;  %v635_v1 = vld [vmem:[%s4924_s7] sm:$0xff]  ;;  %v636_v2 = vld [vmem:[%s4924_s7 + $0x8] sm:$0xff]  ;;  %v653_v3 = vld [vmem:[%s4924_s7 + $0x90] sm:$0xff] }
 0x3cb   :  { %v654_v4 = vld [vmem:[%s4924_s7 + $0x98] sm:$0xff] }
 0x3cc   :  { %2846 = vmatpush3.bf16.msra.mxu0 %v2845_v5 }
 0x3cd   :  { %719 = vmatpush1.bf16.msra.mxu1 %v686_v11  ;;  %v626_v11 = vld [vmem:[%s4922_s27 + $0xb8] sm:$0xff]  ;;  %2848 = vmatprep.subr.bf16.mxu0 %v2847_v6  ;;  %v2873_v6 = vpack.c.bf16 %v636_v2, %v635_v1 }
 0x3ce   :  { %720 = vmatprep.subr.bf16.mxu1 %v689_v12  ;;  %v2849_v12 = vpack.c.bf16 %v608_v9, %v607_v8  ;;  %v2851_v13 = vpack.c.bf16 %v626_v11, %v625_v10  ;;  %v2875_v9 = vpack.c.bf16 %v654_v4, %v653_v3  ;;  %v637_v10 = vld [vmem:[%s4924_s7 + $0x10] sm:$0xff]  ;;  %v638_v11 = vld [vmem:[%s4924_s7 + $0x18] sm:$0xff] }
 0x3d0   :  { %2850 = vmatpush3.bf16.msra.mxu0 %v2849_v12 }
 0x3d1   :  { %721 = vmatpush1.bf16.msra.mxu1 %v688_v17  ;;  %v628_v17 = vld [vmem:[%s4922_s27 + $0xc8] sm:$0xff]  ;;  %2852 = vmatprep.subr.bf16.mxu0 %v2851_v13  ;;  %v655_v13 = vld [vmem:[%s4924_s7 + $0xa0] sm:$0xff] }
 0x3d2   :  { %722 = vmatprep.subr.bf16.mxu1 %v691_v18  ;;  %v2853_v18 = vpack.c.bf16 %v610_v15, %v609_v14  ;;  %v2855_v19 = vpack.c.bf16 %v628_v17, %v627_v16  ;;  %v656_v14 = vld [vmem:[%s4924_s7 + $0xa8] sm:$0xff] }
 0x3d4   :  { %2854 = vmatpush3.bf16.msra.mxu0 %v2853_v18  ;;  %v2877_v18 = vpack.c.bf16 %v638_v11, %v637_v10 }
 0x3d5   :  { %723 = vmatpush1.bf16.msra.mxu1 %v690_v23  ;;  %v630_v23 = vld [vmem:[%s4922_s27 + $0xd8] sm:$0xff]  ;;  %2856 = vmatprep.subr.bf16.mxu0 %v2855_v19  ;;  %v2879_v19 = vpack.c.bf16 %v656_v14, %v655_v13 }
 0x3d6   :  { %724 = vmatprep.subr.bf16.mxu1 %v693_v24  ;;  %v2857_v24 = vpack.c.bf16 %v612_v21, %v611_v20  ;;  %v2859_v25 = vpack.c.bf16 %v630_v23, %v629_v22  ;;  %v639_v20 = vld [vmem:[%s4924_s7 + $0x20] sm:$0xff]  ;;  %v640_v21 = vld [vmem:[%s4924_s7 + $0x28] sm:$0xff]  ;;  %v657_v22 = vld [vmem:[%s4924_s7 + $0xb0] sm:$0xff] }
 0x3d7   :  { %v658_v23 = vld [vmem:[%s4924_s7 + $0xb8] sm:$0xff] }
 0x3d8   :  { %2858 = vmatpush3.bf16.msra.mxu0 %v2857_v24  ;;  %v2881_v24 = vpack.c.bf16 %v640_v21, %v639_v20 }
 0x3d9   :  { %725 = vmatpush1.bf16.msra.mxu1 %v692_v29  ;;  %v632_v29 = vld [vmem:[%s4922_s27 + $0xe8] sm:$0xff]  ;;  %2860 = vmatprep.subr.bf16.mxu0 %v2859_v25  ;;  %v2883_v25 = vpack.c.bf16 %v658_v23, %v657_v22 }
 0x3da   :  { %726 = vmatprep.subr.bf16.mxu1 %v695_v30  ;;  %v2861_v30 = vpack.c.bf16 %v614_v27, %v613_v26  ;;  %v2863_v31 = vpack.c.bf16 %v632_v29, %v631_v28  ;;  %v641_v26 = vld [vmem:[%s4924_s7 + $0x30] sm:$0xff]  ;;  %v642_v27 = vld [vmem:[%s4924_s7 + $0x38] sm:$0xff]  ;;  %v659_v28 = vld [vmem:[%s4924_s7 + $0xc0] sm:$0xff] }
 0x3db   :  { %v660_v29 = vld [vmem:[%s4924_s7 + $0xc8] sm:$0xff] }
 0x3dc   :  { %2862 = vmatpush3.bf16.msra.mxu0 %v2861_v30  ;;  %v2885_v30 = vpack.c.bf16 %v642_v27, %v641_v26 }
 0x3dd   :  { %727 = vmatpush1.bf16.msra.mxu1 %v694_v35  ;;  %v634_v35 = vld [vmem:[%s4922_s27 + $0xf8] sm:$0xff]  ;;  %2864 = vmatprep.subr.bf16.mxu0 %v2863_v31  ;;  %v2887_v31 = vpack.c.bf16 %v660_v29, %v659_v28 }
 0x3de   :  { %728 = vmatprep.subr.bf16.mxu1 %v697_v36  ;;  %v2865_v36 = vpack.c.bf16 %v616_v33, %v615_v32  ;;  %v2867_v37 = vpack.c.bf16 %v634_v35, %v633_v34  ;;  %v643_v32 = vld [vmem:[%s4924_s7 + $0x40] sm:$0xff]  ;;  %v644_v33 = vld [vmem:[%s4924_s7 + $0x48] sm:$0xff]  ;;  %v661_v34 = vld [vmem:[%s4924_s7 + $0xd0] sm:$0xff] }
 0x3df   :  { %v662_v35 = vld [vmem:[%s4924_s7 + $0xd8] sm:$0xff] }
 0x3e0   :  { %2866 = vmatpush3.bf16.msra.mxu0 %v2865_v36  ;;  %v2889_v36 = vpack.c.bf16 %v644_v33, %v643_v32 }
 0x3e1   :  { %729 = vmatpush1.bf16.msra.mxu1 %v696_v39  ;;  %v618_v39 = vld [vmem:[%s4922_s27 + $0x78] sm:$0xff]  ;;  %2868 = vmatprep.subr.bf16.mxu0 %v2867_v37  ;;  %v2891_v37 = vpack.c.bf16 %v662_v35, %v661_v34 }
 0x3e2   :  { %730 = vmatprep.subr.bf16.mxu1 %v699_v44  ;;  %v2869_v40 = vpack.c.bf16 %v618_v39, %v617_v38  ;;  %v3922_v44 = vsub.s32 1, %v3603_v41  ;;  %v651_v41 = vld [vmem:[%s4924_s7 + $0x80] sm:$0xff]  ;;  %v645_v38 = vld [vmem:[%s4924_s7 + $0x50] sm:$0xff]  ;;  %v646_v39 = vld [vmem:[%s4924_s7 + $0x58] sm:$0xff] }
 0x3e3   :  { %v2871_v0 = vpack.c.bf16 %v652_v63, %v651_v41 }
 0x3e4   :  { %2870 = vmatpush3.bf16.msra.mxu0 %v2869_v40  ;;  %v486_v47 = vrot.slane %v181_v43, %v3922_v44  ;;  %v663_v40 = vld [vmem:[%s4924_s7 + $0xe0] sm:$0xff]  ;;  %v664_v43 = vld [vmem:[%s4924_s7 + $0xe8] sm:$0xff] }
 0x3e5   :  { %731 = vmatpush1.bf16.msra.mxu1 %v698_v48  ;;  %2872 = vmatprep.subr.bf16.mxu0 %v2871_v0 }
 0x3e6   :  { %732 = vmatprep.subr.bf16.mxu1 %v701_v52 }
 0x3e9   :  { %733 = vmatpush1.bf16.msra.mxu1 %v700_v55 }
 0x47f   :  { %v526_v48 = vpop.f32.mrb[4].mxu1 }
 0x480   :  { %v527_v50 = vadd.f32 %v526_v48, %v482_v45  ;;  %v528_v51 = vpop.f32.mrb[5].mxu1  ;;  %v647_v48 = vld [vmem:[%s4924_s7 + $0x60] sm:$0xff] }
 0x481   :  { %v529_v52 = vadd.f32 %v528_v51, %v486_v47  ;;  %v530_v53 = vpop.f32.mrb[6].mxu1  ;;  %v665_v51 = vld [vmem:[%s4924_s7 + $0xf0] sm:$0xff] }
 0x482   :  { %v531_v54 = vadd.f32 %v530_v53, %v482_v45  ;;  %v532_v55 = vpop.f32.mrb[7].mxu1  ;;  %v535_v57 = vmax.f32 %v527_v50, 0.0  ;;  %v2893_v45 = vpack.c.bf16 %v646_v39, %v645_v38  ;;  %v648_v50 = vld [vmem:[%s4924_s7 + $0x68] sm:$0xff]  ;;  %v1039_v38 = vld [vmem:[%s4882_s10] sm:$0xff]  ;;  %v1041_v39 = vld [vmem:[%s4882_s10 + $0x10] sm:$0xff] }
 0x483   :  { %v533_v56 = vadd.f32 %v532_v55, %v486_v47  ;;  %v536_v59 = vmax.f32 %v529_v52, 0.0  ;;  %v2895_v47 = vpack.c.bf16 %v664_v43, %v663_v40  ;;  %v666_v52 = vld [vmem:[%s4924_s7 + $0xf8] sm:$0xff]  ;;  %v2897_v53 = vpack.c.bf16 %v648_v50, %v647_v48  ;;  %v649_v55 = vld [vmem:[%s4924_s7 + $0x70] sm:$0xff]  ;;  %v1044_v43 = vld [vmem:[%s4882_s10 + $0x28] sm:$0xff] }
 0x484   :  { %v537_v58 = vmax.f32 %v531_v54, 0.0  ;;  %v2899_v54 = vpack.c.bf16 %v666_v52, %v665_v51  ;;  %v1170_v50 = vpack.c.bf16 %v1041_v39, %v1039_v38  ;;  %v1077_v38 = vld [vmem:[%s4882_s10 + $0x130] sm:$0xff]  ;;  %v1080_v39 = vld [vmem:[%s4882_s10 + $0x148] sm:$0xff] }
 0x485   :  { %v538_v60 = vmax.f32 %v533_v56, 0.0  ;;  %v650_v56 = vld [vmem:[%s4924_s7 + $0x78] sm:$0xff] }
 0x486   :  { %v668_v61 = vpack.c.bf16 %v537_v58, %v535_v57  ;;  %v2901_v57 = vpack.c.bf16 %v650_v56, %v649_v55  ;;  %v1048_v55 = vld [vmem:[%s4882_s10 + $0x48] sm:$0xff]  ;;  %v1050_v56 = vld [vmem:[%s4882_s10 + $0x58] sm:$0xff] }
 0x487   :  { %v669_v62 = vpack.c.bf16 %v538_v60, %v536_v59 }
 0x489   :  { %734 = vmatprep.mubr.bf16.mxu1 %v669_v62 }
 0x48a   :  { %735 = vmatmul.mubr.bf16.vlgmr.msra.gmra.mrb[8].mxu1 %v668_v61 }
 0x48b   :  { %1024 = vmatprep.mubr.bf16.mxu1 %v3170_v7 }
 0x55d   :  { %v3945_v5 = vpop.f32.mrb[8].mxu1 }
 0x55e   :  { %v738_v8 = vpop.f32.mrb[9].mxu1 }
 0x55f   :  { %v3953_v12 = vpop.f32.mrb[10].mxu1  ;;  %809 = vmatprep.mubr.f32.mxu0 %v738_v8 }
 0x560   :  { %v976_v15 = vpack.c.bf16 %v3953_v12, %v3945_v5  ;;  %v742_v16 = vpop.f32.mrb[11].mxu1  ;;  %810 = vmatmul.mubr.f32.vlgmr.msra.gmra.mrb[8].mxu0 %v3945_v5 }
 0x561   :  { %v977_v17 = vpack.c.bf16 %v742_v16, %v738_v8  ;;  %2874 = vmatpush3.bf16.msra.mxu0 %v2873_v6  ;;  %814 = vmatprep.mubr.f32.mxu0 %v742_v16 }
 0x562   :  { %2876 = vmatprep.subr.bf16.mxu0 %v2875_v9 }
 0x563   :  { %992 = vmatprep.subr.bf16.mxu1 %v977_v17 }
 0x564   :  { %815 = vmatmul.mubr.f32.gmra.mrb[10].mxu0 %v3953_v12  ;;  %993 = vmatpush1.bf16.msra.mxu1 %v976_v15 }
 0x565   :  { %2878 = vmatpush3.bf16.msra.mxu0 %v2877_v18  ;;  %884 = vmatprep.mubr.f32.mxu0 %v738_v8 }
 0x566   :  { %2880 = vmatprep.subr.bf16.mxu0 %v2879_v19 }
 0x569   :  { %2882 = vmatpush3.bf16.msra.mxu0 %v2881_v24 }
 0x56a   :  { %2884 = vmatprep.subr.bf16.mxu0 %v2883_v25 }
 0x56d   :  { %2886 = vmatpush3.bf16.msra.mxu0 %v2885_v30  ;;  %v1040_v30 = vld [vmem:[%s4882_s10 + $0x8] sm:$0xff] }
 0x56e   :  { %2888 = vmatprep.subr.bf16.mxu0 %v2887_v31  ;;  %v1042_v31 = vld [vmem:[%s4882_s10 + $0x18] sm:$0xff] }
 0x56f   :  { %v1171_v32 = vpack.c.bf16 %v1042_v31, %v1040_v30  ;;  %v1071_v31 = vld [vmem:[%s4882_s10 + $0x100] sm:$0xff] }
 0x571   :  { %2890 = vmatpush3.bf16.msra.mxu0 %v2889_v36  ;;  %1202 = vmatprep.subr.bf16.mxu1 %v1171_v32  ;;  %v1073_v32 = vld [vmem:[%s4882_s10 + $0x110] sm:$0xff] }
 0x572   :  { %2892 = vmatprep.subr.bf16.mxu0 %v2891_v37 }
 0x575   :  { %2894 = vmatpush3.bf16.msra.mxu0 %v2893_v45  ;;  %v1046_v45 = vld [vmem:[%s4882_s10 + $0x38] sm:$0xff] }
 0x576   :  { %2896 = vmatprep.subr.bf16.mxu0 %v2895_v47  ;;  %v1173_v52 = vpack.c.bf16 %v1046_v45, %v1044_v43 }
 0x579   :  { %2898 = vmatpush3.bf16.msra.mxu0 %v2897_v53  ;;  %v1043_v53 = vld [vmem:[%s4882_s10 + $0x20] sm:$0xff] }
 0x57a   :  { %2900 = vmatprep.subr.bf16.mxu0 %v2899_v54  ;;  %v1045_v54 = vld [vmem:[%s4882_s10 + $0x30] sm:$0xff] }
 0x57d   :  { %2902 = vmatpush3.bf16.msra.mxu0 %v2901_v57  ;;  %v1172_v57 = vpack.c.bf16 %v1045_v54, %v1043_v53  ;;  %v1083_v54 = vld [vmem:[%s4882_s10 + $0x160] sm:$0xff] }
 0x580   :  { %885 = vmatmul.mubr.f32.vlgmr.msra.gmra.mrb[12].mxu0 %v3945_v5 }
 0x581   :  { %889 = vmatprep.mubr.f32.mxu0 %v742_v16 }
 0x584   :  { %890 = vmatmul.mubr.f32.gmra.mrb[14].mxu0 %v3953_v12 }
 0x633   :  { %v2363_v58 = vpop.f32.mrb[8].mxu0 }
 0x634   :  { %v2364_v59 = vpop.f32.mrb[9].mxu0 }
 0x635   :  { %v2365_v60 = vadd.f32 %v2364_v59, %v2363_v58  ;;  %v1175_v58 = vpack.c.bf16 %v1050_v56, %v1048_v55  ;;  %v1047_v59 = vld [vmem:[%s4882_s10 + $0x40] sm:$0xff]  ;;  %v1085_v55 = vld [vmem:[%s4882_s10 + $0x170] sm:$0xff]  ;;  %v1088_v56 = vld [vmem:[%s4882_s10 + $0x188] sm:$0xff] }
 0x637   :  { %v2366_v61 = vpop.f32.mrb[10].mxu0 }
 0x638   :  { %v2367_v62 = vpop.f32.mrb[11].mxu0 }
 0x639   :  { %v2368_v41 = vadd.f32 %v2367_v62, %v2366_v61  ;;  %v1052_v61 = vld [vmem:[%s4882_s10 + $0x68] sm:$0xff]  ;;  %v1054_v62 = vld [vmem:[%s4882_s10 + $0x78] sm:$0xff] }
 0x653   :  { %v2401_v63 = vpop.f32.mrb[12].mxu0 }
 0x654   :  { %v2402_v0 = vpop.f32.mrb[13].mxu0 }
 0x655   :  { %v2403_v1 = vadd.f32 %v2402_v0, %v2401_v63  ;;  %v1177_v63 = vpack.c.bf16 %v1054_v62, %v1052_v61  ;;  %v1051_v0 = vld [vmem:[%s4882_s10 + $0x60] sm:$0xff]  ;;  %v1089_v61 = vld [vmem:[%s4882_s10 + $0x190] sm:$0xff]  ;;  %v1092_v62 = vld [vmem:[%s4882_s10 + $0x1a8] sm:$0xff] }
 0x657   :  { %v2404_v2 = vpop.f32.mrb[14].mxu0  ;;  %929 = vperm.xlu0 %3108, %v2403_v1   ;;  %v1053_v1 = vld [vmem:[%s4882_s10 + $0x70] sm:$0xff] }
 0x658   :  { %v2405_v3 = vpop.f32.mrb[15].mxu0 }
 0x659   :  { %v2406_v4 = vadd.f32 %v2405_v3, %v2404_v2  ;;  %v1056_v2 = vld [vmem:[%s4882_s10 + $0x88] sm:$0xff]  ;;  %v1058_v3 = vld [vmem:[%s4882_s10 + $0x98] sm:$0xff] }
 0x65b   :  { %934 = vperm.xlu1 %3109, %v2406_v4   ;;  %v1176_v4 = vpack.c.bf16 %v1053_v1, %v1051_v0  ;;  %v1091_v1 = vld [vmem:[%s4882_s10 + $0x1a0] sm:$0xff] }
 0x684   :  { %895 = vxpose.xlu1.b32.start [1/2] (short) (narrow) %v2365_v60, 8  ;;  %v1049_v60 = vld [vmem:[%s4882_s10 + $0x50] sm:$0xff] }
 0x688   :  { %896 = vxpose.xlu1.b32.end [2/2] (short) (narrow) %v2368_v41, 8  ;;  %v1174_v41 = vpack.c.bf16 %v1049_v60, %v1047_v59  ;;  %v1087_v60 = vld [vmem:[%s4882_s10 + $0x180] sm:$0xff] }
 0x6d6   :  { %v930_v9 = vpop.permute.xlu0 %929 }
 0x6da   :  { %v935_v5 = vpop.permute.xlu1 %934 }
 0x704   :  { %v911_v6 = vpop.trf.xlu1 }
 0x705   :  { %v940_v8 = vrot.slane %v911_v6, %v3606_v42  ;;  %v1055_v6 = vld [vmem:[%s4882_s10 + $0x80] sm:$0xff] }
 0x707   :  { %v941_v10 = vadd.f32 %v940_v8, %v930_v9  ;;  %v942_v11 = vadd.f32 %v940_v8, %v935_v5  ;;  %v1179_v5 = vpack.c.bf16 %v1058_v3, %v1056_v2  ;;  %v1057_v8 = vld [vmem:[%s4882_s10 + $0x90] sm:$0xff]  ;;  %v1060_v9 = vld [vmem:[%s4882_s10 + $0xa8] sm:$0xff] }
 0x708   :  { %v1093_v2 = vld [vmem:[%s4882_s10 + $0x1b0] sm:$0xff] }
 0x709   :  { %vm943_vm5 = vcmp.gt.f32.partialorder %v941_v10, 0.0  ;;  %v945_v12 = vmul.f32 0.2, %v941_v10  ;;  %vm944_vm6 = vcmp.gt.f32.partialorder %v942_v11, 0.0  ;;  %v946_v13 = vmul.f32 0.2, %v942_v11 }
 0x70a   :  { %v1196_v3 = vpack.c.bf16 %v1093_v2, %v1091_v1  ;;  %v1117_v2 = vld [vmem:[%s4883_s11 + $0x70] sm:$0xff] }
 0x70b   :  { %v947_v14 = vsel %vm943_vm5, %v941_v10, %v945_v12  ;;  %v948_v15 = vsel %vm944_vm6, %v942_v11, %v946_v13  ;;  %v1062_v10 = vld [vmem:[%s4882_s10 + $0xb8] sm:$0xff]  ;;  %v1178_v11 = vpack.c.bf16 %v1057_v8, %v1055_v6  ;;  %v1059_v13 = vld [vmem:[%s4882_s10 + $0xa0] sm:$0xff] }
 0x70c   :  { %v949_v16 = vsel %vm446_vm1, %v947_v14, -1e+30  ;;  %v950_v18 = vsel %vm447_vm4, %v948_v15, -1e+30  ;;  %v1181_v12 = vpack.c.bf16 %v1062_v10, %v1060_v9  ;;  %v1061_v14 = vld [vmem:[%s4882_s10 + $0xb0] sm:$0xff]  ;;  %v1064_v15 = vld [vmem:[%s4882_s10 + $0xc8] sm:$0xff] }
 0x70d   :  { %v951_v17 = vsel %vm450_vm2, %v949_v16, -inf  ;;  %v954_v19 = vsel %vm450_vm2, %v950_v18, -inf  ;;  %v1095_v8 = vld [vmem:[%s4882_s10 + $0x1c0] sm:$0xff]  ;;  %v1097_v9 = vld [vmem:[%s4882_s10 + $0x1d0] sm:$0xff] }
 0x70e   :  { %952 = vmax.xlane.f32.xlu0 %v951_v17  ;;  %v1180_v17 = vpack.c.bf16 %v1061_v14, %v1059_v13  ;;  %v1198_v10 = vpack.c.bf16 %v1097_v9, %v1095_v8  ;;  %v1099_v14 = vld [vmem:[%s4882_s10 + $0x1e0] sm:$0xff] }
 0x712   :  { %955 = vmax.xlane.f32.xlu0 %v954_v19  ;;  %v1063_v19 = vld [vmem:[%s4882_s10 + $0xc0] sm:$0xff] }
 0x79b   :  { %v953_v20 = vpop.xlane.xlu0 %952 }
 0x79c   :  { %v957_v21 = vsub.f32 %v949_v16, %v953_v20  ;;  %v1066_v16 = vld [vmem:[%s4882_s10 + $0xd8] sm:$0xff]  ;;  %v1065_v20 = vld [vmem:[%s4882_s10 + $0xd0] sm:$0xff] }
 0x79e   :  { %v959_v22 = vmul.f32 1.442695, %v957_v21  ;;  %v1068_v21 = vld [vmem:[%s4882_s10 + $0xe8] sm:$0xff] }
 0x79f   :  { %v956_v23 = vpop.xlane.xlu0 %955 }
 0x7a0   :  { %3118 = vpow2.f32 %v959_v22  ;;  %v958_v24 = vsub.f32 %v950_v18, %v956_v23  ;;  %v1183_v18 = vpack.c.bf16 %v1066_v16, %v1064_v15  ;;  %v1070_v22 = vld [vmem:[%s4882_s10 + $0xf8] sm:$0xff]  ;;  %v1182_v23 = vpack.c.bf16 %v1065_v20, %v1063_v19  ;;  %v1101_v15 = vld [vmem:[%s4882_s10 + $0x1f0] sm:$0xff]  ;;  %v1103_v19 = vld [vmem:[%s4883_s11] sm:$0xff] }
 0x7a1   :  { %v1200_v16 = vpack.c.bf16 %v1101_v15, %v1099_v14 }
 0x7a2   :  { %v961_v25 = vmul.f32 1.442695, %v958_v24  ;;  %v1185_v24 = vpack.c.bf16 %v1070_v22, %v1068_v21  ;;  %v1104_v21 = vld [vmem:[%s4883_s11 + $0x8] sm:$0xff]  ;;  %v1121_v22 = vld [vmem:[%s4883_s11 + $0x90] sm:$0xff] }
 0x7a4   :  { %3120 = vpow2.f32 %v961_v25  ;;  %v1067_v25 = vld [vmem:[%s4882_s10 + $0xe0] sm:$0xff] }
 0x7aa   :  { %v3119_v26 = vpop.eup %3118 }
 0x7ab   :  { %v963_v27 = vsel %vm450_vm2, %v3119_v26, 0.0 }
 0x7ac   :  { %964 = vadd.xlane.f32.xlu0 %v963_v27  ;;  %v1072_v27 = vld [vmem:[%s4882_s10 + $0x108] sm:$0xff] }
 0x7ae   :  { %v3121_v28 = vpop.eup %3120 }
 0x7af   :  { %v966_v29 = vsel %vm450_vm2, %v3121_v28, 0.0 }
 0x7b0   :  { %967 = vadd.xlane.f32.xlu0 %v966_v29 }
 0x839   :  { %v965_v33 = vpop.xlane.xlu0 %964 }
 0x83a   :  { %v969_v34 = vmax.f32 %v965_v33, 1e-30  ;;  %v1076_v33 = vld [vmem:[%s4882_s10 + $0x128] sm:$0xff] }
 0x83c   :  { %3122 = vrcp.f32 %v969_v34  ;;  %v1078_v34 = vld [vmem:[%s4882_s10 + $0x138] sm:$0xff] }
 0x83d   :  { %v968_v35 = vpop.xlane.xlu0 %967 }
 0x83e   :  { %v970_v36 = vmax.f32 %v968_v35, 1e-30  ;;  %v1186_v35 = vpack.c.bf16 %v1073_v32, %v1071_v31  ;;  %v1107_v32 = vld [vmem:[%s4883_s11 + $0x20] sm:$0xff] }
 0x840   :  { %3124 = vrcp.f32 %v970_v36  ;;  %v1189_v36 = vpack.c.bf16 %v1078_v34, %v1076_v33  ;;  %v1108_v33 = vld [vmem:[%s4883_s11 + $0x28] sm:$0xff]  ;;  %v1125_v34 = vld [vmem:[%s4883_s11 + $0xb0] sm:$0xff] }
 0x846   :  { %v3123_v37 = vpop.eup %3122 }
 0x847   :  { %v973_v47 = vmul.f32 %v3123_v37, %v3119_v26  ;;  %v1069_v26 = vld [vmem:[%s4882_s10 + $0xf0] sm:$0xff]  ;;  %v1075_v37 = vld [vmem:[%s4882_s10 + $0x120] sm:$0xff] }
 0x848   :  { %v1184_v29 = vpack.c.bf16 %v1069_v26, %v1067_v25  ;;  %v1188_v43 = vpack.c.bf16 %v1077_v38, %v1075_v37  ;;  %v1105_v26 = vld [vmem:[%s4883_s11 + $0x10] sm:$0xff] }
 0x849   :  { %v1109_v38 = vld [vmem:[%s4883_s11 + $0x30] sm:$0xff] }
 0x84a   :  { %v3125_v40 = vpop.eup %3124 }
 0x84b   :  { %v974_v48 = vmul.f32 %v3125_v40, %v3121_v28  ;;  %v1074_v28 = vld [vmem:[%s4882_s10 + $0x118] sm:$0xff] }
 0x84c   :  { %v1187_v30 = vpack.c.bf16 %v1074_v28, %v1072_v27  ;;  %v1082_v40 = vld [vmem:[%s4882_s10 + $0x158] sm:$0xff]  ;;  %v1123_v28 = vld [vmem:[%s4883_s11 + $0xa0] sm:$0xff] }
 0x84d   :  { %v975_v51 = vpack.c.bf16 %v974_v48, %v973_v47  ;;  %v1191_v45 = vpack.c.bf16 %v1082_v40, %v1080_v39  ;;  %v1079_v47 = vld [vmem:[%s4882_s10 + $0x140] sm:$0xff]  ;;  %v1081_v48 = vld [vmem:[%s4882_s10 + $0x150] sm:$0xff]  ;;  %v1106_v27 = vld [vmem:[%s4883_s11 + $0x18] sm:$0xff] }
 0x84e   :  { %v1110_v39 = vld [vmem:[%s4883_s11 + $0x38] sm:$0xff]  ;;  %v1127_v40 = vld [vmem:[%s4883_s11 + $0xc0] sm:$0xff] }
 0x84f   :  { %2251 = vmatmul.mubr.msk.bf16.vlgmr.msra.gmra.mrb[12].mxu1 %vm450_vm2, %v975_v51  ;;  %v1086_v51 = vld [vmem:[%s4882_s10 + $0x178] sm:$0xff] }
 0x850   :  { %1203 = vmatpush1.bf16.msra.mxu1 %v1170_v50  ;;  %v1084_v50 = vld [vmem:[%s4882_s10 + $0x168] sm:$0xff] }
 0x851   :  { %1204 = vmatprep.subr.bf16.mxu1 %v1173_v52  ;;  %v1190_v52 = vpack.c.bf16 %v1081_v48, %v1079_v47  ;;  %v1193_v53 = vpack.c.bf16 %v1086_v51, %v1084_v50  ;;  %v1111_v48 = vld [vmem:[%s4883_s11 + $0x40] sm:$0xff]  ;;  %v1112_v50 = vld [vmem:[%s4883_s11 + $0x48] sm:$0xff]  ;;  %v1129_v51 = vld [vmem:[%s4883_s11 + $0xd0] sm:$0xff] }
 0x854   :  { %1205 = vmatpush1.bf16.msra.mxu1 %v1172_v57  ;;  %v1090_v57 = vld [vmem:[%s4882_s10 + $0x198] sm:$0xff] }
 0x855   :  { %1206 = vmatprep.subr.bf16.mxu1 %v1175_v58  ;;  %v1192_v58 = vpack.c.bf16 %v1085_v55, %v1083_v54  ;;  %v1195_v59 = vpack.c.bf16 %v1090_v57, %v1088_v56  ;;  %v1113_v55 = vld [vmem:[%s4883_s11 + $0x50] sm:$0xff]  ;;  %v1114_v56 = vld [vmem:[%s4883_s11 + $0x58] sm:$0xff]  ;;  %v1131_v57 = vld [vmem:[%s4883_s11 + $0xe0] sm:$0xff] }
 0x858   :  { %1207 = vmatpush1.bf16.msra.mxu1 %v1174_v41  ;;  %v1094_v41 = vld [vmem:[%s4882_s10 + $0x1b8] sm:$0xff] }
 0x859   :  { %1208 = vmatprep.subr.bf16.mxu1 %v1177_v63  ;;  %v1194_v63 = vpack.c.bf16 %v1089_v61, %v1087_v60  ;;  %v1197_v0 = vpack.c.bf16 %v1094_v41, %v1092_v62  ;;  %v1115_v61 = vld [vmem:[%s4883_s11 + $0x60] sm:$0xff]  ;;  %v1116_v62 = vld [vmem:[%s4883_s11 + $0x68] sm:$0xff]  ;;  %v1133_v41 = vld [vmem:[%s4883_s11 + $0xf0] sm:$0xff] }
 0x85c   :  { %1209 = vmatpush1.bf16.msra.mxu1 %v1176_v4  ;;  %v1096_v4 = vld [vmem:[%s4882_s10 + $0x1c8] sm:$0xff] }
 0x85d   :  { %1210 = vmatprep.subr.bf16.mxu1 %v1179_v5  ;;  %v1098_v5 = vld [vmem:[%s4882_s10 + $0x1d8] sm:$0xff] }
 0x85e   :  { %v1199_v6 = vpack.c.bf16 %v1098_v5, %v1096_v4  ;;  %v667_v5 = vld [vmem:[%s4925_s1] sm:$0x3] }
 0x85f   :  { %v986_v8 = vrot.slane %v667_v5, %v3922_v44 }
 0x860   :  { %1211 = vmatpush1.bf16.msra.mxu1 %v1178_v11  ;;  %v1100_v11 = vld [vmem:[%s4882_s10 + $0x1e8] sm:$0xff] }
 0x861   :  { %1212 = vmatprep.subr.bf16.mxu1 %v1181_v12  ;;  %v1102_v12 = vld [vmem:[%s4882_s10 + $0x1f8] sm:$0xff] }
 0x862   :  { %v1201_v13 = vpack.c.bf16 %v1102_v12, %v1100_v11 }
 0x864   :  { %1213 = vmatpush1.bf16.msra.mxu1 %v1180_v17  ;;  %v1119_v17 = vld [vmem:[%s4883_s11 + $0x80] sm:$0xff] }
 0x865   :  { %1214 = vmatprep.subr.bf16.mxu1 %v1183_v18  ;;  %v1120_v18 = vld [vmem:[%s4883_s11 + $0x88] sm:$0xff] }
 0x866   :  { %v2903_v20 = vpack.c.bf16 %v1120_v18, %v1119_v17 }
 0x868   :  { %1215 = vmatpush1.bf16.msra.mxu1 %v1182_v23  ;;  %v1122_v23 = vld [vmem:[%s4883_s11 + $0x98] sm:$0xff]  ;;  %2904 = vmatprep.subr.bf16.mxu0 %v2903_v20 }
 0x869   :  { %1216 = vmatprep.subr.bf16.mxu1 %v1185_v24  ;;  %v2905_v24 = vpack.c.bf16 %v1104_v21, %v1103_v19  ;;  %v2907_v25 = vpack.c.bf16 %v1122_v23, %v1121_v22  ;;  %v1151_v23 = vld [vmem:[%s4884_s12 + $0x80] sm:$0xff] }
 0x86b   :  { %2906 = vmatpush3.bf16.msra.mxu0 %v2905_v24  ;;  %v1152_v24 = vld [vmem:[%s4884_s12 + $0x88] sm:$0xff] }
 0x86c   :  { %1217 = vmatpush1.bf16.msra.mxu1 %v1184_v29  ;;  %v1124_v29 = vld [vmem:[%s4883_s11 + $0xa8] sm:$0xff]  ;;  %2908 = vmatprep.subr.bf16.mxu0 %v2907_v25  ;;  %v2935_v25 = vpack.c.bf16 %v1152_v24, %v1151_v23 }
 0x86d   :  { %1218 = vmatprep.subr.bf16.mxu1 %v1187_v30  ;;  %v2909_v30 = vpack.c.bf16 %v1106_v27, %v1105_v26  ;;  %v2911_v31 = vpack.c.bf16 %v1124_v29, %v1123_v28  ;;  %v1135_v26 = vld [vmem:[%s4884_s12] sm:$0xff]  ;;  %v1136_v27 = vld [vmem:[%s4884_s12 + $0x8] sm:$0xff]  ;;  %v1154_v28 = vld [vmem:[%s4884_s12 + $0x98] sm:$0xff] }
 0x86f   :  { %2910 = vmatpush3.bf16.msra.mxu0 %v2909_v30  ;;  %v2937_v30 = vpack.c.bf16 %v1136_v27, %v1135_v26 }
 0x870   :  { %1219 = vmatpush1.bf16.msra.mxu1 %v1186_v35  ;;  %v1126_v35 = vld [vmem:[%s4883_s11 + $0xb8] sm:$0xff]  ;;  %2912 = vmatprep.subr.bf16.mxu0 %v2911_v31 }
 0x871   :  { %1220 = vmatprep.subr.bf16.mxu1 %v1189_v36  ;;  %v2913_v36 = vpack.c.bf16 %v1108_v33, %v1107_v32  ;;  %v2915_v37 = vpack.c.bf16 %v1126_v35, %v1125_v34  ;;  %v1137_v33 = vld [vmem:[%s4884_s12 + $0x10] sm:$0xff]  ;;  %v1138_v34 = vld [vmem:[%s4884_s12 + $0x18] sm:$0xff] }
 0x873   :  { %2914 = vmatpush3.bf16.msra.mxu0 %v2913_v36  ;;  %v1155_v36 = vld [vmem:[%s4884_s12 + $0xa0] sm:$0xff] }
 0x874   :  { %1221 = vmatpush1.bf16.msra.mxu1 %v1188_v43  ;;  %v1128_v43 = vld [vmem:[%s4883_s11 + $0xc8] sm:$0xff]  ;;  %2916 = vmatprep.subr.bf16.mxu0 %v2915_v37 }
 0x875   :  { %1222 = vmatprep.subr.bf16.mxu1 %v1191_v45  ;;  %v2917_v45 = vpack.c.bf16 %v1110_v39, %v1109_v38  ;;  %v2919_v47 = vpack.c.bf16 %v1128_v43, %v1127_v40  ;;  %v1156_v37 = vld [vmem:[%s4884_s12 + $0xa8] sm:$0xff]  ;;  %v2941_v43 = vpack.c.bf16 %v1138_v34, %v1137_v33 }
 0x877   :  { %2918 = vmatpush3.bf16.msra.mxu0 %v2917_v45  ;;  %v2943_v45 = vpack.c.bf16 %v1156_v37, %v1155_v36 }
 0x878   :  { %1223 = vmatpush1.bf16.msra.mxu1 %v1190_v52  ;;  %v1130_v52 = vld [vmem:[%s4883_s11 + $0xd8] sm:$0xff]  ;;  %2920 = vmatprep.subr.bf16.mxu0 %v2919_v47  ;;  %v1139_v47 = vld [vmem:[%s4884_s12 + $0x20] sm:$0xff] }
 0x879   :  { %1224 = vmatprep.subr.bf16.mxu1 %v1193_v53  ;;  %v2921_v53 = vpack.c.bf16 %v1112_v50, %v1111_v48  ;;  %v2923_v54 = vpack.c.bf16 %v1130_v52, %v1129_v51  ;;  %v1140_v48 = vld [vmem:[%s4884_s12 + $0x28] sm:$0xff]  ;;  %v1157_v50 = vld [vmem:[%s4884_s12 + $0xb0] sm:$0xff]  ;;  %v1158_v51 = vld [vmem:[%s4884_s12 + $0xb8] sm:$0xff] }
 0x87a   :  { %v2945_v52 = vpack.c.bf16 %v1140_v48, %v1139_v47 }
 0x87b   :  { %2922 = vmatpush3.bf16.msra.mxu0 %v2921_v53  ;;  %v2947_v53 = vpack.c.bf16 %v1158_v51, %v1157_v50 }
 0x87c   :  { %1225 = vmatpush1.bf16.msra.mxu1 %v1192_v58  ;;  %v1132_v58 = vld [vmem:[%s4883_s11 + $0xe8] sm:$0xff]  ;;  %2924 = vmatprep.subr.bf16.mxu0 %v2923_v54  ;;  %v1141_v54 = vld [vmem:[%s4884_s12 + $0x30] sm:$0xff] }
 0x87d   :  { %1226 = vmatprep.subr.bf16.mxu1 %v1195_v59  ;;  %v2925_v59 = vpack.c.bf16 %v1114_v56, %v1113_v55  ;;  %v2927_v60 = vpack.c.bf16 %v1132_v58, %v1131_v57  ;;  %v1142_v55 = vld [vmem:[%s4884_s12 + $0x38] sm:$0xff]  ;;  %v1159_v56 = vld [vmem:[%s4884_s12 + $0xc0] sm:$0xff]  ;;  %v1160_v57 = vld [vmem:[%s4884_s12 + $0xc8] sm:$0xff] }
 0x87e   :  { %v2949_v58 = vpack.c.bf16 %v1142_v55, %v1141_v54 }
 0x87f   :  { %2926 = vmatpush3.bf16.msra.mxu0 %v2925_v59  ;;  %v2951_v59 = vpack.c.bf16 %v1160_v57, %v1159_v56  ;;  %v1555_v57 = vld [vmem:[%s4886_s14 + $0x80] sm:$0xff] }
 0x880   :  { %1227 = vmatpush1.bf16.msra.mxu1 %v1194_v63  ;;  %v1134_v63 = vld [vmem:[%s4883_s11 + $0xf8] sm:$0xff]  ;;  %2928 = vmatprep.subr.bf16.mxu0 %v2927_v60  ;;  %v1143_v60 = vld [vmem:[%s4884_s12 + $0x40] sm:$0xff] }
 0x881   :  { %1228 = vmatprep.subr.bf16.mxu1 %v1197_v0  ;;  %v2929_v0 = vpack.c.bf16 %v1116_v62, %v1115_v61  ;;  %v2931_v1 = vpack.c.bf16 %v1134_v63, %v1133_v41  ;;  %v1144_v61 = vld [vmem:[%s4884_s12 + $0x48] sm:$0xff]  ;;  %v1161_v62 = vld [vmem:[%s4884_s12 + $0xd0] sm:$0xff]  ;;  %v1162_v41 = vld [vmem:[%s4884_s12 + $0xd8] sm:$0xff] }
 0x882   :  { %v2953_v63 = vpack.c.bf16 %v1144_v61, %v1143_v60 }
 0x883   :  { %2930 = vmatpush3.bf16.msra.mxu0 %v2929_v0  ;;  %v2955_v0 = vpack.c.bf16 %v1162_v41, %v1161_v62 }
 0x884   :  { %1229 = vmatpush1.bf16.msra.mxu1 %v1196_v3  ;;  %v1118_v3 = vld [vmem:[%s4883_s11 + $0x78] sm:$0xff]  ;;  %2932 = vmatprep.subr.bf16.mxu0 %v2931_v1  ;;  %v1145_v1 = vld [vmem:[%s4884_s12 + $0x50] sm:$0xff] }
 0x885   :  { %1230 = vmatprep.subr.bf16.mxu1 %v1199_v6  ;;  %v2933_v4 = vpack.c.bf16 %v1118_v3, %v1117_v2  ;;  %v982_v6 = vrot.slane %v667_v5, %v3606_v42  ;;  %v1146_v2 = vld [vmem:[%s4884_s12 + $0x58] sm:$0xff]  ;;  %v1163_v3 = vld [vmem:[%s4884_s12 + $0xe0] sm:$0xff] }
 0x886   :  { %v2957_v5 = vpack.c.bf16 %v1146_v2, %v1145_v1  ;;  %v1540_v1 = vld [vmem:[%s4886_s14 + $0x8] sm:$0xff] }
 0x887   :  { %2934 = vmatpush3.bf16.msra.mxu0 %v2933_v4  ;;  %v1164_v4 = vld [vmem:[%s4884_s12 + $0xe8] sm:$0xff] }
 0x888   :  { %1231 = vmatpush1.bf16.msra.mxu1 %v1198_v10  ;;  %2936 = vmatprep.subr.bf16.mxu0 %v2935_v25 }
 0x889   :  { %1232 = vmatprep.subr.bf16.mxu1 %v1201_v13 }
 0x88c   :  { %1233 = vmatpush1.bf16.msra.mxu1 %v1200_v16 }
 0x922   :  { %v1026_v9 = vpop.f32.mrb[12].mxu1 }
 0x923   :  { %v1027_v10 = vadd.f32 %v1026_v9, %v982_v6  ;;  %v1028_v11 = vpop.f32.mrb[13].mxu1  ;;  %v1148_v9 = vld [vmem:[%s4884_s12 + $0x68] sm:$0xff] }
 0x924   :  { %v1029_v12 = vadd.f32 %v1028_v11, %v986_v8  ;;  %v1030_v13 = vpop.f32.mrb[14].mxu1  ;;  %v1166_v11 = vld [vmem:[%s4884_s12 + $0xf8] sm:$0xff] }
 0x925   :  { %v1031_v14 = vadd.f32 %v1030_v13, %v982_v6  ;;  %v1032_v15 = vpop.f32.mrb[15].mxu1  ;;  %v1035_v17 = vmax.f32 %v1027_v10, 0.0  ;;  %v2959_v6 = vpack.c.bf16 %v1164_v4, %v1163_v3  ;;  %v1165_v10 = vld [vmem:[%s4884_s12 + $0xf0] sm:$0xff]  ;;  %v1558_v4 = vld [vmem:[%s4886_s14 + $0x98] sm:$0xff] }
 0x926   :  { %v1033_v16 = vadd.f32 %v1032_v15, %v986_v8  ;;  %v1036_v19 = vmax.f32 %v1029_v12, 0.0  ;;  %v1147_v8 = vld [vmem:[%s4884_s12 + $0x60] sm:$0xff]  ;;  %v2963_v13 = vpack.c.bf16 %v1166_v11, %v1165_v10  ;;  %v1150_v15 = vld [vmem:[%s4884_s12 + $0x78] sm:$0xff]  ;;  %v1557_v3 = vld [vmem:[%s4886_s14 + $0x90] sm:$0xff] }
 0x927   :  { %v1037_v18 = vmax.f32 %v1031_v14, 0.0  ;;  %v2961_v12 = vpack.c.bf16 %v1148_v9, %v1147_v8  ;;  %v1149_v14 = vld [vmem:[%s4884_s12 + $0x70] sm:$0xff]  ;;  %v1615_v10 = vpack.c.bf16 %v1558_v4, %v1557_v3  ;;  %v1579_v4 = vld [vmem:[%s4887_s15 + $0x40] sm:$0xff] }
 0x928   :  { %v1038_v20 = vmax.f32 %v1033_v16, 0.0  ;;  %v2965_v16 = vpack.c.bf16 %v1150_v15, %v1149_v14  ;;  %v1541_v11 = vld [vmem:[%s4886_s14 + $0x10] sm:$0xff]  ;;  %v1560_v14 = vld [vmem:[%s4886_s14 + $0xa8] sm:$0xff] }
 0x929   :  { %v1168_v21 = vpack.c.bf16 %v1037_v18, %v1035_v17 }
 0x92a   :  { %v1169_v22 = vpack.c.bf16 %v1038_v20, %v1036_v19 }
 0x92c   :  { %1234 = vmatprep.mubr.bf16.mxu1 %v1169_v22 }
 0x92d   :  { %1235 = vmatmul.mubr.bf16.vlgmr.msra.gmra.mrb[16].mxu1 %v1168_v21 }
 0x92e   :  { %1524 = vmatprep.mubr.bf16.mxu1 %v3170_v7  ;;  %v1153_v7 = vld [vmem:[%s4884_s12 + $0x90] sm:$0xff] }
 0x92f   :  { %v2939_v32 = vpack.c.bf16 %v1154_v28, %v1153_v7 }
 0xa00   :  { %v4355_v29 = vpop.f32.mrb[16].mxu1 }
 0xa01   :  { %v1238_v31 = vpop.f32.mrb[17].mxu1 }
 0xa02   :  { %v4363_v35 = vpop.f32.mrb[18].mxu1  ;;  %1309 = vmatprep.mubr.f32.mxu0 %v1238_v31 }
 0xa03   :  { %v1476_v38 = vpack.c.bf16 %v4363_v35, %v4355_v29  ;;  %v1242_v39 = vpop.f32.mrb[19].mxu1  ;;  %1310 = vmatmul.mubr.f32.vlgmr.msra.gmra.mrb[16].mxu0 %v4355_v29 }
 0xa04   :  { %v1477_v40 = vpack.c.bf16 %v1242_v39, %v1238_v31  ;;  %2938 = vmatpush3.bf16.msra.mxu0 %v2937_v30  ;;  %1314 = vmatprep.mubr.f32.mxu0 %v1242_v39 }
 0xa05   :  { %2940 = vmatprep.subr.bf16.mxu0 %v2939_v32 }
 0xa06   :  { %1492 = vmatprep.subr.bf16.mxu1 %v1477_v40 }
 0xa07   :  { %1315 = vmatmul.mubr.f32.gmra.mrb[18].mxu0 %v4363_v35  ;;  %1493 = vmatpush1.bf16.msra.mxu1 %v1476_v38 }
 0xa08   :  { %2942 = vmatpush3.bf16.msra.mxu0 %v2941_v43  ;;  %1384 = vmatprep.mubr.f32.mxu0 %v1238_v31 }
 0xa09   :  { %2944 = vmatprep.subr.bf16.mxu0 %v2943_v45 }
 0xa0c   :  { %2946 = vmatpush3.bf16.msra.mxu0 %v2945_v52 }
 0xa0d   :  { %2948 = vmatprep.subr.bf16.mxu0 %v2947_v53 }
 0xa10   :  { %2950 = vmatpush3.bf16.msra.mxu0 %v2949_v58  ;;  %v1556_v58 = vld [vmem:[%s4886_s14 + $0x88] sm:$0xff] }
 0xa11   :  { %2952 = vmatprep.subr.bf16.mxu0 %v2951_v59  ;;  %v1614_v59 = vpack.c.bf16 %v1556_v58, %v1555_v57  ;;  %v1588_v58 = vld [vmem:[%s4888_s16 + $0x8] sm:$0xff] }
 0xa13   :  { %2483 = vmatprep.subr.bf16.mxu1 %v1614_v59  ;;  %v1573_v59 = vld [vmem:[%s4887_s15 + $0x10] sm:$0xff] }
 0xa14   :  { %2954 = vmatpush3.bf16.msra.mxu0 %v2953_v63 }
 0xa15   :  { %2956 = vmatprep.subr.bf16.mxu0 %v2955_v0  ;;  %v1539_v0 = vld [vmem:[%s4886_s14] sm:$0xff] }
 0xa16   :  { %v1606_v8 = vpack.c.bf16 %v1540_v1, %v1539_v0  ;;  %v1577_v1 = vld [vmem:[%s4887_s15 + $0x30] sm:$0xff] }
 0xa18   :  { %2958 = vmatpush3.bf16.msra.mxu0 %v2957_v5 }
 0xa19   :  { %2960 = vmatprep.subr.bf16.mxu0 %v2959_v6 }
 0xa1c   :  { %2962 = vmatpush3.bf16.msra.mxu0 %v2961_v12  ;;  %v1542_v12 = vld [vmem:[%s4886_s14 + $0x18] sm:$0xff] }
 0xa1d   :  { %2964 = vmatprep.subr.bf16.mxu0 %v2963_v13  ;;  %v1559_v13 = vld [vmem:[%s4886_s14 + $0xa0] sm:$0xff]  ;;  %v1607_v15 = vpack.c.bf16 %v1542_v12, %v1541_v11  ;;  %v1584_v12 = vld [vmem:[%s4887_s15 + $0x68] sm:$0xff] }
 0xa1e   :  { %v1583_v11 = vld [vmem:[%s4887_s15 + $0x60] sm:$0xff] }
 0xa20   :  { %2966 = vmatpush3.bf16.msra.mxu0 %v2965_v16  ;;  %v1616_v16 = vpack.c.bf16 %v1560_v14, %v1559_v13  ;;  %v2991_v13 = vpack.c.bf16 %v1584_v12, %v1583_v11  ;;  %v1167_v14 = vld [vmem:[%s4885_s13] sm:$0x3] }
 0xa23   :  { %1385 = vmatmul.mubr.f32.vlgmr.msra.gmra.mrb[20].mxu0 %v4355_v29 }
 0xa24   :  { %1389 = vmatprep.mubr.f32.mxu0 %v1242_v39 }
 0xa27   :  { %1390 = vmatmul.mubr.f32.gmra.mrb[22].mxu0 %v4363_v35 }
 0xad6   :  { %v2439_v17 = vpop.f32.mrb[16].mxu0 }
 0xad7   :  { %v2440_v18 = vpop.f32.mrb[17].mxu0 }
 0xad8   :  { %v2441_v19 = vadd.f32 %v2440_v18, %v2439_v17  ;;  %v1543_v17 = vld [vmem:[%s4886_s14 + $0x20] sm:$0xff]  ;;  %v1544_v18 = vld [vmem:[%s4886_s14 + $0x28] sm:$0xff] }
 0xada   :  { %v2442_v20 = vpop.f32.mrb[18].mxu0 }
 0xadb   :  { %v2443_v21 = vpop.f32.mrb[19].mxu0 }
 0xadc   :  { %v2444_v22 = vadd.f32 %v2443_v21, %v2442_v20  ;;  %v1562_v20 = vld [vmem:[%s4886_s14 + $0xb8] sm:$0xff]  ;;  %v1608_v21 = vpack.c.bf16 %v1544_v18, %v1543_v17 }
 0xaf6   :  { %v2477_v23 = vpop.f32.mrb[20].mxu0 }
 0xaf7   :  { %v2478_v24 = vpop.f32.mrb[21].mxu0 }
 0xaf8   :  { %v2479_v25 = vadd.f32 %v2478_v24, %v2477_v23  ;;  %v1545_v23 = vld [vmem:[%s4886_s14 + $0x30] sm:$0xff]  ;;  %v1546_v24 = vld [vmem:[%s4886_s14 + $0x38] sm:$0xff] }
 0xafa   :  { %v2480_v26 = vpop.f32.mrb[22].mxu0  ;;  %1429 = vperm.xlu1 %3109, %v2479_v25   ;;  %v1563_v25 = vld [vmem:[%s4886_s14 + $0xc0] sm:$0xff] }
 0xafb   :  { %v2481_v27 = vpop.f32.mrb[23].mxu0 }
 0xafc   :  { %v2482_v7 = vadd.f32 %v2481_v27, %v2480_v26  ;;  %v1564_v26 = vld [vmem:[%s4886_s14 + $0xc8] sm:$0xff]  ;;  %v1609_v27 = vpack.c.bf16 %v1546_v24, %v1545_v23 }
 0xafe   :  { %1434 = vperm.xlu0 %3108, %v2482_v7   ;;  %v1618_v7 = vpack.c.bf16 %v1564_v26, %v1563_v25 }
 0xb1c   :  { %1395 = vxpose.xlu0.b32.start [1/2] (short) (narrow) %v2441_v19, 8  ;;  %v1561_v19 = vld [vmem:[%s4886_s14 + $0xb0] sm:$0xff] }
 0xb20   :  { %1396 = vxpose.xlu0.b32.end [2/2] (short) (narrow) %v2444_v22, 8  ;;  %v1617_v22 = vpack.c.bf16 %v1562_v20, %v1561_v19 }
 0xb79   :  { %v1430_v31 = vpop.permute.xlu1 %1429 }
 0xb7d   :  { %v1435_v28 = vpop.permute.xlu0 %1434 }
 0xb9c   :  { %v1411_v29 = vpop.trf.xlu0 }
 0xb9d   :  { %v1440_v30 = vrot.slane %v1411_v29, %v3606_v42  ;;  %v1548_v29 = vld [vmem:[%s4886_s14 + $0x48] sm:$0xff] }
 0xb9f   :  { %v1441_v32 = vadd.f32 %v1440_v30, %v1430_v31  ;;  %v1442_v33 = vadd.f32 %v1440_v30, %v1435_v28  ;;  %v1547_v28 = vld [vmem:[%s4886_s14 + $0x40] sm:$0xff]  ;;  %v1565_v30 = vld [vmem:[%s4886_s14 + $0xd0] sm:$0xff]  ;;  %v1566_v31 = vld [vmem:[%s4886_s14 + $0xd8] sm:$0xff] }
 0xba1   :  { %vm1444_vm7 = vcmp.gt.f32.partialorder %v1442_v33, 0.0  ;;  %v1446_v34 = vmul.f32 0.2, %v1442_v33  ;;  %vm1443_vm8 = vcmp.gt.f32.partialorder %v1441_v32, 0.0  ;;  %v1445_v35 = vmul.f32 0.2, %v1441_v32 }
 0xba3   :  { %v1448_v36 = vsel %vm1444_vm7, %v1442_v33, %v1446_v34  ;;  %v1447_v37 = vsel %vm1443_vm8, %v1441_v32, %v1445_v35  ;;  %v1610_v32 = vpack.c.bf16 %v1548_v29, %v1547_v28  ;;  %v1619_v33 = vpack.c.bf16 %v1566_v31, %v1565_v30  ;;  %v1549_v34 = vld [vmem:[%s4886_s14 + $0x50] sm:$0xff]  ;;  %v1550_v35 = vld [vmem:[%s4886_s14 + $0x58] sm:$0xff] }
 0xba4   :  { %v1450_v38 = vsel %vm447_vm4, %v1448_v36, -1e+30  ;;  %v1449_v39 = vsel %vm446_vm1, %v1447_v37, -1e+30  ;;  %v1611_v36 = vpack.c.bf16 %v1550_v35, %v1549_v34  ;;  %v1567_v37 = vld [vmem:[%s4886_s14 + $0xe0] sm:$0xff]  ;;  %v1589_v28 = vld [vmem:[%s4888_s16 + $0x10] sm:$0xff] }
 0xba5   :  { %v1454_v40 = vsel %vm450_vm2, %v1450_v38, -inf  ;;  %v1451_v43 = vsel %vm450_vm2, %v1449_v39, -inf  ;;  %v1593_v35 = vld [vmem:[%s4888_s16 + $0x30] sm:$0xff] }
 0xba6   :  { %1455 = vmax.xlane.f32.xlu0 %v1454_v40  ;;  %1452 = vmax.xlane.f32.xlu1 %v1451_v43  ;;  %v1551_v40 = vld [vmem:[%s4886_s14 + $0x60] sm:$0xff]  ;;  %v1552_v43 = vld [vmem:[%s4886_s14 + $0x68] sm:$0xff] }
 0xc33   :  { %v1456_v45 = vpop.xlane.xlu0 %1455  ;;  %v1453_v47 = vpop.xlane.xlu1 %1452 }
 0xc34   :  { %v1458_v48 = vsub.f32 %v1450_v38, %v1456_v45  ;;  %v1457_v50 = vsub.f32 %v1449_v39, %v1453_v47  ;;  %v1568_v38 = vld [vmem:[%s4886_s14 + $0xe8] sm:$0xff]  ;;  %v1612_v45 = vpack.c.bf16 %v1552_v43, %v1551_v40  ;;  %v1569_v47 = vld [vmem:[%s4886_s14 + $0xf0] sm:$0xff] }
 0xc35   :  { %v1620_v39 = vpack.c.bf16 %v1568_v38, %v1567_v37  ;;  %v1595_v38 = vld [vmem:[%s4888_s16 + $0x40] sm:$0xff]  ;;  %v1597_v43 = vld [vmem:[%s4888_s16 + $0x50] sm:$0xff] }
 0xc36   :  { %v1459_v51 = vmul.f32 1.442695, %v1457_v50  ;;  %v1461_v52 = vmul.f32 1.442695, %v1458_v48  ;;  %v1570_v48 = vld [vmem:[%s4886_s14 + $0xf8] sm:$0xff] }
 0xc37   :  { %v1621_v50 = vpack.c.bf16 %v1570_v48, %v1569_v47  ;;  %v1599_v48 = vld [vmem:[%s4888_s16 + $0x60] sm:$0xff] }
 0xc38   :  { %3126 = vpow2.f32 %v1459_v51  ;;  %v1553_v51 = vld [vmem:[%s4886_s14 + $0x70] sm:$0xff] }
 0xc39   :  { %3128 = vpow2.f32 %v1461_v52  ;;  %v1554_v52 = vld [vmem:[%s4886_s14 + $0x78] sm:$0xff] }
 0xc42   :  { %v3127_v53 = vpop.eup %3126 }
 0xc43   :  { %v1463_v54 = vsel %vm450_vm2, %v3127_v53, 0.0  ;;  %v3129_v55 = vpop.eup %3128 }
 0xc44   :  { %1464 = vadd.xlane.f32.xlu1 %v1463_v54  ;;  %v1466_v56 = vsel %vm450_vm2, %v3129_v55, 0.0  ;;  %v1571_v54 = vld [vmem:[%s4887_s15] sm:$0xff] }
 0xc48   :  { %1467 = vadd.xlane.f32.xlu1 %v1466_v56  ;;  %v1587_v56 = vld [vmem:[%s4888_s16] sm:$0xff] }
 0xcd1   :  { %v1465_v60 = vpop.xlane.xlu1 %1464 }
 0xcd2   :  { %v1469_v61 = vmax.f32 %v1465_v60, 1e-30  ;;  %v1574_v60 = vld [vmem:[%s4887_s15 + $0x18] sm:$0xff] }
 0xcd4   :  { %3130 = vrcp.f32 %v1469_v61  ;;  %v2999_v61 = vpack.c.bf16 %v1588_v58, %v1587_v56  ;;  %v1602_v56 = vld [vmem:[%s4888_s16 + $0x78] sm:$0xff]  ;;  %v3171_v58 = vmov 0.0  }
 0xcd5   :  { %v1468_v62 = vpop.xlane.xlu1 %1467 }
 0xcd6   :  { %v1470_v41 = vmax.f32 %v1468_v62, 1e-30  ;;  %v2971_v62 = vpack.c.bf16 %v1574_v60, %v1573_v59 }
 0xcd8   :  { %3132 = vrcp.f32 %v1470_v41  ;;  %v1575_v41 = vld [vmem:[%s4887_s15 + $0x20] sm:$0xff] }
 0xcde   :  { %v3131_v63 = vpop.eup %3130 }
 0xcdf   :  { %v1473_v5 = vmul.f32 %v3131_v63, %v3127_v53  ;;  %v1613_v53 = vpack.c.bf16 %v1554_v52, %v1553_v51  ;;  %v1576_v63 = vld [vmem:[%s4887_s15 + $0x28] sm:$0xff]  ;;  %v1585_v52 = vld [vmem:[%s4887_s15 + $0x70] sm:$0xff] }
 0xce0   :  { %v2975_v0 = vpack.c.bf16 %v1576_v63, %v1575_v41 }
 0xce2   :  { %v3133_v2 = vpop.eup %3132 }
 0xce3   :  { %v1474_v6 = vmul.f32 %v3133_v2, %v3129_v55  ;;  %v1572_v55 = vld [vmem:[%s4887_s15 + $0x8] sm:$0xff]  ;;  %v1578_v2 = vld [vmem:[%s4887_s15 + $0x38] sm:$0xff] }
 0xce4   :  { %v2967_v57 = vpack.c.bf16 %v1572_v55, %v1571_v54  ;;  %v2979_v3 = vpack.c.bf16 %v1578_v2, %v1577_v1  ;;  %v1601_v54 = vld [vmem:[%s4888_s16 + $0x70] sm:$0xff] }
 0xce5   :  { %v1475_v9 = vpack.c.bf16 %v1474_v6, %v1473_v5  ;;  %v1580_v5 = vld [vmem:[%s4887_s15 + $0x48] sm:$0xff] }
 0xce6   :  { %2968 = vmatprep.subr.bf16.mxu0 %v2967_v57  ;;  %v2983_v6 = vpack.c.bf16 %v1580_v5, %v1579_v4 }
 0xce7   :  { %2252 = vmatmul.mubr.msk.bf16.vlgmr.msra.gmra.mrb[20].mxu1 %vm450_vm2, %v1475_v9  ;;  %2970 = vmatpush3.bf16.msra.mxu0 %v2967_v57  ;;  %v1582_v9 = vld [vmem:[%s4887_s15 + $0x58] sm:$0xff]  ;;  %v3027_v57 = vpack.c.bf16 %v1602_v56, %v1601_v54 }
 0xce8   :  { %2484 = vmatpush3.bf16.msra.mxu1 %v1606_v8  ;;  %2972 = vmatprep.subr.bf16.mxu0 %v2971_v62  ;;  %v1581_v8 = vld [vmem:[%s4887_s15 + $0x50] sm:$0xff]  ;;  %v1967_v56 = vld [vmem:[%s4890_s18 + $0x58] sm:$0xff] }
 0xce9   :  { %2485 = vmatprep.subr.bf16.mxu1 %v1615_v10  ;;  %v2987_v10 = vpack.c.bf16 %v1582_v9, %v1581_v8 }
 0xceb   :  { %2974 = vmatpush3.bf16.msra.mxu0 %v2971_v62 }
 0xcec   :  { %2486 = vmatpush3.bf16.msra.mxu1 %v1607_v15  ;;  %2976 = vmatprep.subr.bf16.mxu0 %v2975_v0  ;;  %v1482_v15 = vrot.slane %v1167_v14, %v3606_v42 }
 0xced   :  { %2487 = vmatprep.subr.bf16.mxu1 %v1616_v16  ;;  %v1486_v16 = vrot.slane %v1167_v14, %v3922_v44  ;;  %v1590_v44 = vld [vmem:[%s4888_s16 + $0x18] sm:$0xff] }
 0xcee   :  { %v3003_v31 = vpack.c.bf16 %v1590_v44, %v1589_v28  ;;  %v1958_v28 = vld [vmem:[%s4890_s18 + $0x10] sm:$0xff]  ;;  %v3173_v44 = vmov 0.0|0.0  }
 0xcef   :  { %2978 = vmatpush3.bf16.msra.mxu0 %v2975_v0 }
 0xcf0   :  { %2488 = vmatpush3.bf16.msra.mxu1 %v1608_v21  ;;  %2980 = vmatprep.subr.bf16.mxu0 %v2979_v3 }
 0xcf1   :  { %2489 = vmatprep.subr.bf16.mxu1 %v1617_v22 }
 0xcf3   :  { %2982 = vmatpush3.bf16.msra.mxu0 %v2979_v3 }
 0xcf4   :  { %2490 = vmatpush3.bf16.msra.mxu1 %v1609_v27  ;;  %2984 = vmatprep.subr.bf16.mxu0 %v2983_v6 }
 0xcf5   :  { %2491 = vmatprep.subr.bf16.mxu1 %v1618_v7 }
 0xcf7   :  { %2986 = vmatpush3.bf16.msra.mxu0 %v2983_v6 }
 0xcf8   :  { %2492 = vmatpush3.bf16.msra.mxu1 %v1610_v32  ;;  %2988 = vmatprep.subr.bf16.mxu0 %v2987_v10  ;;  %v1591_v32 = vld [vmem:[%s4888_s16 + $0x20] sm:$0xff] }
 0xcf9   :  { %2493 = vmatprep.subr.bf16.mxu1 %v1619_v33  ;;  %v1592_v33 = vld [vmem:[%s4888_s16 + $0x28] sm:$0xff] }
 0xcfa   :  { %v3007_v34 = vpack.c.bf16 %v1592_v33, %v1591_v32  ;;  %v1960_v32 = vld [vmem:[%s4890_s18 + $0x20] sm:$0xff]  ;;  %v1961_v33 = vld [vmem:[%s4890_s18 + $0x28] sm:$0xff] }
 0xcfb   :  { %2990 = vmatpush3.bf16.msra.mxu0 %v2987_v10 }
 0xcfc   :  { %2494 = vmatpush3.bf16.msra.mxu1 %v1611_v36  ;;  %2992 = vmatprep.subr.bf16.mxu0 %v2991_v13  ;;  %v1594_v36 = vld [vmem:[%s4888_s16 + $0x38] sm:$0xff] }
 0xcfd   :  { %2495 = vmatprep.subr.bf16.mxu1 %v1620_v39  ;;  %v3011_v37 = vpack.c.bf16 %v1594_v36, %v1593_v35  ;;  %v1596_v39 = vld [vmem:[%s4888_s16 + $0x48] sm:$0xff] }
 0xcfe   :  { %v3015_v40 = vpack.c.bf16 %v1596_v39, %v1595_v38 }
 0xcff   :  { %2994 = vmatpush3.bf16.msra.mxu0 %v2991_v13 }
 0xd00   :  { %2496 = vmatpush3.bf16.msra.mxu1 %v1612_v45  ;;  %v1598_v45 = vld [vmem:[%s4888_s16 + $0x58] sm:$0xff] }
 0xd01   :  { %2497 = vmatprep.subr.bf16.mxu1 %v1621_v50  ;;  %v3019_v47 = vpack.c.bf16 %v1598_v45, %v1597_v43  ;;  %v1600_v50 = vld [vmem:[%s4888_s16 + $0x68] sm:$0xff] }
 0xd02   :  { %v3023_v51 = vpack.c.bf16 %v1600_v50, %v1599_v48  ;;  %v1962_v48 = vld [vmem:[%s4890_s18 + $0x30] sm:$0xff]  ;;  %v1963_v50 = vld [vmem:[%s4890_s18 + $0x38] sm:$0xff] }
 0xd04   :  { %2498 = vmatpush3.bf16.msra.mxu1 %v1613_v53  ;;  %v1586_v53 = vld [vmem:[%s4887_s15 + $0x78] sm:$0xff] }
 0xd05   :  { %3000 = vmatprep.subr.bf16.mxu1 %v2999_v61  ;;  %v2995_v55 = vpack.c.bf16 %v1586_v53, %v1585_v52  ;;  %v1964_v52 = vld [vmem:[%s4890_s18 + $0x40] sm:$0xff]  ;;  %v1965_v53 = vld [vmem:[%s4890_s18 + $0x48] sm:$0xff] }
 0xd06   :  { %v3044_v54 = vpack.c.bf16 %v1965_v53, %v1964_v52  ;;  %v2140_v52 = vld [vmem:[%s4894_s22 + $0x40] sm:$0xff]  ;;  %v2141_v53 = vld [vmem:[%s4894_s22 + $0x48] sm:$0xff] }
 0xd07   :  { %2996 = vmatprep.subr.bf16.mxu0 %v2995_v55 }
 0xd08   :  { %2998 = vmatpush3.bf16.msra.mxu0 %v2995_v55  ;;  %v1966_v55 = vld [vmem:[%s4890_s18 + $0x50] sm:$0xff] }
 0xd09   :  { %3031 = vmatprep.subr.bf16.mxu0 %v3173_v44 }
 0xdba   :  { %v1526_v17 = vpop.f32.mrb[20].mxu1 }
 0xdbb   :  { %v1527_v18 = vadd.f32 %v1526_v17, %v1482_v15  ;;  %v1528_v19 = vpop.f32.mrb[21].mxu1 }
 0xdbc   :  { %v1529_v20 = vadd.f32 %v1528_v19, %v1486_v16  ;;  %v1530_v21 = vpop.f32.mrb[22].mxu1 }
 0xdbd   :  { %v1531_v22 = vadd.f32 %v1530_v21, %v1482_v15  ;;  %v1532_v23 = vpop.f32.mrb[23].mxu1  ;;  %v1535_v25 = vmax.f32 %v1527_v18, 0.0 }
 0xdbe   :  { %v1533_v24 = vadd.f32 %v1532_v23, %v1486_v16  ;;  %v1536_v27 = vmax.f32 %v1529_v20, 0.0 }
 0xdbf   :  { %v1537_v26 = vmax.f32 %v1531_v22, 0.0 }
 0xdc0   :  { %v1538_v7 = vmax.f32 %v1533_v24, 0.0 }
 0xdc1   :  { %v1604_v29 = vpack.c.bf16 %v1537_v26, %v1535_v25 }
 0xdc2   :  { %v1605_v30 = vpack.c.bf16 %v1538_v7, %v1536_v27  ;;  %v1957_v7 = vld [vmem:[%s4890_s18 + $0x8] sm:$0xff] }
 0xdc4   :  { %1654 = vmatprep.mubr.bf16.mxu1 %v1605_v30  ;;  %v1959_v30 = vld [vmem:[%s4890_s18 + $0x18] sm:$0xff] }
 0xdc5   :  { %1655 = vmatmul.mubr.bf16.vlgmr.msra.gmra.mrb[24].mxu1 %v1604_v29  ;;  %v3032_v29 = vpack.c.bf16 %v1957_v7, %v1956_v49 }
 0xdc6   :  { %3002 = vmatpush3.bf16.msra.mxu1 %v2999_v61 }
 0xdc7   :  { %3004 = vmatprep.subr.bf16.mxu1 %v3003_v31 }
 0xdca   :  { %3006 = vmatpush3.bf16.msra.mxu1 %v3003_v31  ;;  %v3035_v31 = vpack.c.bf16 %v1959_v30, %v1958_v28 }
 0xdcb   :  { %3008 = vmatprep.subr.bf16.mxu1 %v3007_v34 }
 0xdce   :  { %3010 = vmatpush3.bf16.msra.mxu1 %v3007_v34  ;;  %v3038_v34 = vpack.c.bf16 %v1961_v33, %v1960_v32  ;;  %v2058_v33 = vld [vmem:[%s4892_s20 + $0x70] sm:$0xff] }
 0xdcf   :  { %3012 = vmatprep.subr.bf16.mxu1 %v3011_v37 }
 0xdd2   :  { %3014 = vmatpush3.bf16.msra.mxu1 %v3011_v37 }
 0xdd3   :  { %3016 = vmatprep.subr.bf16.mxu1 %v3015_v40 }
 0xdd6   :  { %3018 = vmatpush3.bf16.msra.mxu1 %v3015_v40 }
 0xdd7   :  { %3020 = vmatprep.subr.bf16.mxu1 %v3019_v47 }
 0xdda   :  { %3022 = vmatpush3.bf16.msra.mxu1 %v3019_v47 }
 0xddb   :  { %3024 = vmatprep.subr.bf16.mxu1 %v3023_v51 }
 0xdde   :  { %3026 = vmatpush3.bf16.msra.mxu1 %v3023_v51  ;;  %v3041_v51 = vpack.c.bf16 %v1963_v50, %v1962_v48  ;;  %v2138_v48 = vld [vmem:[%s4894_s22 + $0x30] sm:$0xff]  ;;  %v2139_v50 = vld [vmem:[%s4894_s22 + $0x38] sm:$0xff] }
 0xddf   :  { %3028 = vmatprep.subr.bf16.mxu1 %v3027_v57 }
 0xde2   :  { %3030 = vmatpush3.bf16.msra.mxu1 %v3027_v57  ;;  %v3047_v57 = vpack.c.bf16 %v1967_v56, %v1966_v55  ;;  %v2142_v55 = vld [vmem:[%s4894_s22 + $0x50] sm:$0xff]  ;;  %v2143_v56 = vld [vmem:[%s4894_s22 + $0x58] sm:$0xff] }
 0xde3   :  { %2664 = vmatprep.subr.bf16.mxu1 %v3171_v58 }
 0xe98   :  { %v2499_v59 = vpop.f32.mrb[24].mxu1 }
 0xe99   :  { %v2500_v60 = vpop.f32.mrb[25].mxu1 }
 0xe9a   :  { %v2501_v61 = vadd.f32 %v2500_v60, %v2499_v59  ;;  %v2502_v62 = vpop.f32.mrb[26].mxu1  ;;  %v1968_v59 = vld [vmem:[%s4890_s18 + $0x60] sm:$0xff]  ;;  %v1969_v60 = vld [vmem:[%s4890_s18 + $0x68] sm:$0xff] }
 0xe9b   :  { %v2503_v41 = vpop.f32.mrb[27].mxu1 }
 0xe9c   :  { %v2504_v63 = vadd.f32 %v2503_v41, %v2502_v62  ;;  %2626 = vmatprep.mubr.f32.mxu0 %v2501_v61  ;;  %2661 = vmatprep.mubr.f32.mxu1 %v2501_v61  ;;  %v1970_v62 = vld [vmem:[%s4890_s18 + $0x70] sm:$0xff]  ;;  %v1971_v41 = vld [vmem:[%s4890_s18 + $0x78] sm:$0xff] }
 0xe9e   :  { %v1894_v0 = vpack.c.bf16 %v2504_v63, %v2501_v61  ;;  %2627 = vmatmul.mubr.f32.vlgmr.msra.gmra.mrb[24].mxu0 %v2504_v63  ;;  %2662 = vmatmul.mubr.f32.vlgmr.msra.gmra.mrb[28].mxu1 %v2504_v63  ;;  %v3050_v61 = vpack.c.bf16 %v1969_v60, %v1968_v59  ;;  %v3053_v63 = vpack.c.bf16 %v1971_v41, %v1970_v62  ;;  %v2144_v59 = vld [vmem:[%s4894_s22 + $0x60] sm:$0xff]  ;;  %v2145_v60 = vld [vmem:[%s4894_s22 + $0x68] sm:$0xff] }
 0xe9f   :  { %2666 = vmatprep.mubr.msk.bf16.mxu1 %vm3172_vm11, %v3171_v58  ;;  %2702 = vmatprep.mubr.msk.f32.mxu0 %vm3172_vm11, %v3171_v58  ;;  %v1972_v62 = vld [vmem:[%s4891_s19] sm:$0x1] }
 0xea0   :  { %2665 = vmatpush3.bf16.msra.mxu1 %v1894_v0  ;;  %3033 = vmatpush3.bf16.msra.mxu0 %v3032_v29  ;;  %v2044_v0 = vld [vmem:[%s4892_s20] sm:$0xff] }
 0xea1   :  { %3055 = vmatprep.subr.bf16.mxu1 %v3173_v44  ;;  %3034 = vmatprep.subr.bf16.mxu0 %v3173_v44 }
 0xea4   :  { %3036 = vmatpush3.bf16.msra.mxu0 %v3035_v31 }
 0xea5   :  { %3037 = vmatprep.subr.bf16.mxu0 %v3173_v44 }
 0xea8   :  { %3039 = vmatpush3.bf16.msra.mxu0 %v3038_v34  ;;  %v2059_v34 = vld [vmem:[%s4892_s20 + $0x78] sm:$0xff] }
 0xea9   :  { %3040 = vmatprep.subr.bf16.mxu0 %v3173_v44 }
 0xeac   :  { %3042 = vmatpush3.bf16.msra.mxu0 %v3041_v51  ;;  %v3089_v51 = vpack.c.bf16 %v2139_v50, %v2138_v48 }
 0xead   :  { %3043 = vmatprep.subr.bf16.mxu0 %v3173_v44 }
 0xeb0   :  { %3045 = vmatpush3.bf16.msra.mxu0 %v3044_v54  ;;  %v3092_v54 = vpack.c.bf16 %v2141_v53, %v2140_v52 }
 0xeb1   :  { %3046 = vmatprep.subr.bf16.mxu0 %v3173_v44 }
 0xeb4   :  { %3048 = vmatpush3.bf16.msra.mxu0 %v3047_v57  ;;  %v3095_v57 = vpack.c.bf16 %v2143_v56, %v2142_v55 }
 0xeb5   :  { %3049 = vmatprep.subr.bf16.mxu0 %v3173_v44 }
 0xeb8   :  { %3051 = vmatpush3.bf16.msra.mxu0 %v3050_v61  ;;  %v3098_v61 = vpack.c.bf16 %v2145_v60, %v2144_v59 }
 0xeb9   :  { %3052 = vmatprep.subr.bf16.mxu0 %v3173_v44 }
 0xebc   :  { %3054 = vmatpush3.bf16.msra.mxu0 %v3053_v63 }
 0xebd   :  { %3079 = vmatprep.subr.bf16.mxu0 %v3173_v44 }
 0xf71   :  { %v2628_v1 = vpop.f32.mrb[24].mxu0  ;;  %v2663_v2 = vpop.f32.mrb[28].mxu1 }
 0xf72   :  { %1852 = vperm.xlu1 %3109, %v2663_v2   ;;  %v1729_v3 = vpop.f32.mrb[25].mxu0  ;;  %v1804_v4 = vpop.f32.mrb[29].mxu1  ;;  %v2046_v2 = vld [vmem:[%s4892_s20 + $0x10] sm:$0xff] }
 0xf76   :  { %1847 = vperm.xlu1 %3109, %v1804_v4   ;;  %v2047_v4 = vld [vmem:[%s4892_s20 + $0x18] sm:$0xff] }
 0xf9f   :  { %1813 = vxpose.xlu1.b32.start [1/2] (short) (narrow) %v1729_v3, 8 }
 0xfa3   :  { %1814 = vxpose.xlu1.b32.end [2/2] (short) (narrow) %v2628_v1, 8  ;;  %v2045_v1 = vld [vmem:[%s4892_s20 + $0x8] sm:$0xff] }
 0xfa4   :  { %v3056_v3 = vpack.c.bf16 %v2045_v1, %v2044_v0 }
 0xff1   :  { %v1853_v5 = vpop.permute.xlu1 %1852 }
 0xff5   :  { %v1848_v6 = vpop.permute.xlu1 %1847 }
0x101f   :  { %v1829_v8 = vpop.trf.xlu1 }
0x1020   :  { %v1858_v9 = vrot.slane %v1829_v8, %v3606_v42  ;;  %v2049_v8 = vld [vmem:[%s4892_s20 + $0x28] sm:$0xff] }
0x1022   :  { %v1859_v10 = vadd.f32 %v1858_v9, %v1848_v6  ;;  %v1860_v11 = vadd.f32 %v1858_v9, %v1853_v5  ;;  %v3059_v5 = vpack.c.bf16 %v2047_v4, %v2046_v2  ;;  %v2048_v6 = vld [vmem:[%s4892_s20 + $0x20] sm:$0xff]  ;;  %v2146_v2 = vld [vmem:[%s4894_s22 + $0x70] sm:$0xff] }
0x1023   :  { %v3062_v9 = vpack.c.bf16 %v2049_v8, %v2048_v6 }
0x1024   :  { %vm1861_vm9 = vcmp.gt.f32.partialorder %v1859_v10, 0.0  ;;  %v1863_v12 = vmul.f32 0.2, %v1859_v10  ;;  %vm1862_vm10 = vcmp.gt.f32.partialorder %v1860_v11, 0.0  ;;  %v1864_v13 = vmul.f32 0.2, %v1860_v11 }
0x1026   :  { %v1865_v14 = vsel %vm1861_vm9, %v1859_v10, %v1863_v12  ;;  %v1866_v15 = vsel %vm1862_vm10, %v1860_v11, %v1864_v13  ;;  %v2050_v10 = vld [vmem:[%s4892_s20 + $0x30] sm:$0xff]  ;;  %v2051_v11 = vld [vmem:[%s4892_s20 + $0x38] sm:$0xff]  ;;  %v2052_v13 = vld [vmem:[%s4892_s20 + $0x40] sm:$0xff] }
0x1027   :  { %v1867_v16 = vsel %vm446_vm1, %v1865_v14, -1e+30  ;;  %v1868_v18 = vsel %vm447_vm4, %v1866_v15, -1e+30  ;;  %v3065_v12 = vpack.c.bf16 %v2051_v11, %v2050_v10  ;;  %v2053_v14 = vld [vmem:[%s4892_s20 + $0x48] sm:$0xff] }
0x1028   :  { %v1869_v17 = vsel %vm450_vm2, %v1867_v16, -inf  ;;  %v1872_v19 = vsel %vm450_vm2, %v1868_v18, -inf  ;;  %v3068_v15 = vpack.c.bf16 %v2053_v14, %v2052_v13  ;;  %v2148_v10 = vld [vmem:[%s4895_s23] sm:$0x1] }
0x1029   :  { %1870 = vmax.xlane.f32.xlu0 %v1869_v17  ;;  %v2055_v17 = vld [vmem:[%s4892_s20 + $0x58] sm:$0xff] }
0x102d   :  { %1873 = vmax.xlane.f32.xlu0 %v1872_v19  ;;  %v2056_v19 = vld [vmem:[%s4892_s20 + $0x60] sm:$0xff] }
0x10b6   :  { %v1871_v42 = vpop.xlane.xlu0 %1870 }
0x10b7   :  { %v1875_v20 = vsub.f32 %v1867_v16, %v1871_v42  ;;  %v2054_v16 = vld [vmem:[%s4892_s20 + $0x50] sm:$0xff]  ;;  %v2057_v42 = vld [vmem:[%s4892_s20 + $0x68] sm:$0xff] }
0x10b9   :  { %v1877_v21 = vmul.f32 1.442695, %v1875_v20  ;;  %v3074_v20 = vpack.c.bf16 %v2057_v42, %v2056_v19 }
0x10ba   :  { %v1874_v22 = vpop.xlane.xlu0 %1873 }
0x10bb   :  { %3134 = vpow2.f32 %v1877_v21  ;;  %v1876_v23 = vsub.f32 %v1868_v18, %v1874_v22  ;;  %v3071_v18 = vpack.c.bf16 %v2055_v17, %v2054_v16  ;;  %v2253_v21 = vld [vmem:[%s4889_s17] ss:$0 sm:$0xff] }
0x10bd   :  { %v1879_v24 = vmul.f32 1.442695, %v1876_v23 }
0x10bf   :  { %3136 = vpow2.f32 %v1879_v24 }
0x10c5   :  { %v3135_v25 = vpop.eup %3134 }
0x10c6   :  { %v1881_v46 = vsel %vm450_vm2, %v3135_v25, 0.0 }
0x10c7   :  { %1882 = vadd.xlane.f32.xlu0 %v1881_v46 }
0x10c9   :  { %v3137_v26 = vpop.eup %3136 }
0x10ca   :  { %v1884_v27 = vsel %vm450_vm2, %v3137_v26, 0.0 }
0x10cb   :  { %1885 = vadd.xlane.f32.xlu0 %v1884_v27 }
0x1154   :  { %v1883_v35 = vpop.xlane.xlu0 %1882 }
0x1155   :  { %v1887_v36 = vmax.f32 %v1883_v35, 1e-30  ;;  %v3077_v35 = vpack.c.bf16 %v2059_v34, %v2058_v33 }
0x1157   :  { %3138 = vrcp.f32 %v1887_v36  ;;  %v2132_v36 = vld [vmem:[%s4894_s22] sm:$0xff] }
0x1158   :  { %v1886_v37 = vpop.xlane.xlu0 %1885 }
0x1159   :  { %v1888_v38 = vmax.f32 %v1886_v37, 1e-30  ;;  %v2133_v37 = vld [vmem:[%s4894_s22 + $0x8] sm:$0xff] }
0x115b   :  { %3140 = vrcp.f32 %v1888_v38  ;;  %v3080_v38 = vpack.c.bf16 %v2133_v37, %v2132_v36 }
0x1161   :  { %v3139_v39 = vpop.eup %3138 }
0x1162   :  { %v1891_v40 = vmul.f32 %v3139_v39, %v3135_v25  ;;  %v2135_v39 = vld [vmem:[%s4894_s22 + $0x18] sm:$0xff] }
0x1164   :  { %1945 = vst.msk [vmem:[%s4897_s25] sm:$0xff] %vm450_vm2, %v1891_v40 }
0x1165   :  { %v3141_v43 = vpop.eup %3140 }
0x1166   :  { %v1892_v45 = vmul.f32 %v3141_v43, %v3137_v26  ;;  %v2136_v43 = vld [vmem:[%s4894_s22 + $0x20] sm:$0xff] }
0x1168   :  { %1946 = vst.msk [vmem:[%s4897_s25 + $0x8] sm:$0xff] %vm450_vm2, %v1892_v45  ;;  %v1893_v47 = vpack.c.bf16 %v1892_v45, %v1891_v40  ;;  %v2137_v45 = vld [vmem:[%s4894_s22 + $0x28] sm:$0xff] }
0x116a   :  { %2667 = vmatmul.mubr.msk.bf16.vlgmr.msra.gmra.mrb[32].mxu1 %vm450_vm2, %v1893_v47  ;;  %v3086_v47 = vpack.c.bf16 %v2137_v45, %v2136_v43 }
0x116b   :  { %2737 = vmatprep.mubr.msk.f32.mxu1 %vm3172_vm11, %v3171_v58  ;;  %3057 = vmatpush3.bf16.msra.mxu1 %v3056_v3  ;;  %v2147_v3 = vld [vmem:[%s4894_s22 + $0x78] sm:$0xff] }
0x116c   :  { %3058 = vmatprep.subr.bf16.mxu1 %v3173_v44  ;;  %v3101_v4 = vpack.c.bf16 %v2147_v3, %v2146_v2 }
0x116f   :  { %3060 = vmatpush3.bf16.msra.mxu1 %v3059_v5 }
0x1170   :  { %3061 = vmatprep.subr.bf16.mxu1 %v3173_v44 }
0x1173   :  { %3063 = vmatpush3.bf16.msra.mxu1 %v3062_v9 }
0x1174   :  { %3064 = vmatprep.subr.bf16.mxu1 %v3173_v44 }
0x1177   :  { %3066 = vmatpush3.bf16.msra.mxu1 %v3065_v12 }
0x1178   :  { %3067 = vmatprep.subr.bf16.mxu1 %v3173_v44 }
0x117b   :  { %3069 = vmatpush3.bf16.msra.mxu1 %v3068_v15 }
0x117c   :  { %3070 = vmatprep.subr.bf16.mxu1 %v3173_v44 }
0x117f   :  { %3072 = vmatpush3.bf16.msra.mxu1 %v3071_v18 }
0x1180   :  { %3073 = vmatprep.subr.bf16.mxu1 %v3173_v44 }
0x1183   :  { %3075 = vmatpush3.bf16.msra.mxu1 %v3074_v20 }
0x1184   :  { %3076 = vmatprep.subr.bf16.mxu1 %v3173_v44 }
0x1187   :  { %3078 = vmatpush3.bf16.msra.mxu1 %v3077_v35 }
0x123d   :  { %v1938_v22 = vpop.f32.mrb[32].mxu1 }
0x123e   :  { %v2668_v23 = vpop.f32.mrb[33].mxu1  ;;  %v1939_v25 = vadd.f32 %v2253_v21, %v1938_v22 }
0x123f   :  { %v1941_v24 = vpop.f32.mrb[34].mxu1 }
0x1240   :  { %v1942_v46 = vadd.f32 %v2253_v21, %v1941_v24  ;;  %v2669_v26 = vpop.f32.mrb[35].mxu1 }
0x1242   :  { %v1947_v27 = vadd.f32 %v1942_v46, %v1939_v25 }
0x1244   :  { %v1948_v49 = vrot.slane %v1947_v27, 4 }
0x1246   :  { %v1949_v7 = vadd.f32 %v1948_v49, %v1947_v27 }
0x1248   :  { %v1950_v28 = vrot.slane %v1949_v7, 2 }
0x124a   :  { %v1951_v29 = vadd.f32 %v1950_v28, %v1949_v7 }
0x124c   :  { %v1952_v30 = vrot.slane %v1951_v29, 1 }
0x124e   :  { %v1953_v31 = vadd.f32 %v1952_v30, %v1951_v29 }
0x1250   :  { %v1955_v32 = vmul.f32 0.0625, %v1953_v31 }
0x1252   :  { %2703 = vmatmul.mubr.f32.vlgmr.msra.gmra.mrb[26].mxu0 %v1955_v32 }
0x1253   :  { %2772 = vmatprep.mubr.msk.f32.mxu0 %vm3172_vm11, %v3171_v58  ;;  %v2134_v58 = vld [vmem:[%s4894_s22 + $0x10] sm:$0xff]  ;;  %3081 = vmatpush3.bf16.msra.mxu0 %v3080_v38 }
0x1254   :  { %v3083_v40 = vpack.c.bf16 %v2135_v39, %v2134_v58  ;;  %3082 = vmatprep.subr.bf16.mxu0 %v3173_v44 }
0x1257   :  { %3084 = vmatpush3.bf16.msra.mxu0 %v3083_v40 }
0x1258   :  { %3085 = vmatprep.subr.bf16.mxu0 %v3173_v44 }
0x125b   :  { %3087 = vmatpush3.bf16.msra.mxu0 %v3086_v47 }
0x125c   :  { %3088 = vmatprep.subr.bf16.mxu0 %v3173_v44 }
0x125f   :  { %3090 = vmatpush3.bf16.msra.mxu0 %v3089_v51 }
0x1260   :  { %3091 = vmatprep.subr.bf16.mxu0 %v3173_v44 }
0x1263   :  { %3093 = vmatpush3.bf16.msra.mxu0 %v3092_v54 }
0x1264   :  { %3094 = vmatprep.subr.bf16.mxu0 %v3173_v44 }
0x1267   :  { %3096 = vmatpush3.bf16.msra.mxu0 %v3095_v57 }
0x1268   :  { %3097 = vmatprep.subr.bf16.mxu0 %v3173_v44 }
0x126b   :  { %3099 = vmatpush3.bf16.msra.mxu0 %v3098_v61 }
0x126c   :  { %3100 = vmatprep.subr.bf16.mxu0 %v3173_v44  ;;  %v2060_v44 = vld [vmem:[%s4893_s21] sm:$0x1]  ;;  %s3174_s21 = smov [#allocation2]  }
0x126d   :  { %s2238_s22 = sshll.u32 %s3174_s21, 4  ;;  %s2239_s22 = int_to_ptr.vmem [resolvable:$true] %s2238_s22 }
0x126e   :  { %s3146_s23 = scalar_lea.vmem %s2239_s22, 16  ;;  %s3150_s1 = scalar_lea.vmem %s2239_s22, 32 }
0x126f   :  { %3102 = vmatpush3.bf16.msra.mxu0 %v3101_v4  ;;  %p3147_p0 = scmp.ne.s32.totalorder %s2239_s22, %s3146_s23  ;;  %p3151_p1 = scmp.lt.s32.totalorder %s2239_s22, %s2239_s22 }
0x1270   :  { %p3152_p2 = scmp.lt.s32.totalorder %s3150_s1, %s3146_s23 }
0x1272   :  { %p3153_p3 = por %p3152_p2, %p3151_p1 }
0x1274   :  { %p3154_p4 = pnand %p3153_p3, %p3147_p0 }
0x1325   :  { %v2039_v41 = vpop.f32.mrb[26].mxu0 }
0x1326   :  { %v2040_v63 = vadd.f32 %v2039_v41, %v1972_v62  ;;  %v2704_v0 = vpop.f32.mrb[27].mxu0 }
0x1328   :  { %v2043_v1 = vmax.f32 %v2040_v63, 0.0 }
0x132a   :  { %2738 = vmatmul.mubr.f32.vlgmr.msra.gmra.mrb[30].mxu1 %v2043_v1 }
0x13fd   :  { %v2127_v5 = vpop.f32.mrb[30].mxu1 }
0x13fe   :  { %v2128_v6 = vadd.f32 %v2127_v5, %v2060_v44  ;;  %v2739_v8 = vpop.f32.mrb[31].mxu1 }
0x1400   :  { %v2131_v9 = vmax.f32 %v2128_v6, 0.0 }
0x1402   :  { %2773 = vmatmul.mubr.f32.vlgmr.msra.gmra.mrb[28].mxu0 %v2131_v9 }
0x14d5   :  { %v2215_v11 = vpop.f32.mrb[28].mxu0 }
0x14d6   :  { %v2216_v12 = vadd.f32 %v2215_v11, %v2148_v10  ;;  %v2774_v13 = vpop.f32.mrb[29].mxu0 }
0x14d8   :  { %v2220_v14 = vsel %vm2219_vm12, %v2216_v12, -inf }
0x14d9   :  { %2221 = vmax.xlane.f32.xlu0 %v2220_v14 }
0x1566   :  { %v2222_v15 = vpop.xlane.xlu0 %2221 }
0x1567   :  { %v2223_v16 = vsub.f32 %v2216_v12, %v2222_v15 }
0x1569   :  { %v2224_v17 = vmul.f32 1.442695, %v2223_v16 }
0x156b   :  { %3142 = vpow2.f32 %v2224_v17 }
0x1575   :  { %v3143_v18 = vpop.eup %3142 }
0x1576   :  { %v2226_v19 = vsel %vm2219_vm12, %v3143_v18, 0.0 }
0x1577   :  { %2227 = vadd.xlane.f32.xlu0 %v2226_v19 }
0x1604   :  { %v2228_v42 = vpop.xlane.xlu0 %2227 }
0x1605   :  { %3144 = vrcp.f32 %v2228_v42 }
0x160f   :  { %v3145_v20 = vpop.eup %3144 }
0x1610   :  { %v2230_v21 = vmul.f32 %v3145_v20, %v3143_v18 }
0x1612   :  { %2231 = vst.msk [vmem:[#allocation2] sm:$0x1] %vm2219_vm12, %v2230_v21 }
0x1613   :  { %3157 = shalt.err (!%p3154_p4)
}
0x1614   :  { %s3158_s9 = scalar_lea.hbm %s4896_s24, 16 }
0x1615   :  { %p3159_p5 = scmp.ne.s32.totalorder %s4896_s24, %s3158_s9  ;;  %p3162_p6 = scmp.lt.u32.totalorder %s3158_s9, %s4896_s24 }
0x1617   :  { %p3164_p7 = pnand %p3162_p6, %p3159_p5 }
0x1619   :  { %3167 = shalt.err (!%p3164_p7)
}
0x161a   :  { %2241 = dma.vmem_to_hbm [thread:$0]  %s2239_s22, 16, %s4896_s24, [#allocation3]  }
0x161b   :  { %3168 = dma.done.wait [#allocation3], 16  }
0x161c   :  { %3169 = vsyncadd [#allocation3], 4294967280 }
0x161d   :  { %2249 = vsyncpa [#allocation3], 1 }

</bundles_post_ra>
